<compile_context>
chip_gen: v7x
topology: tpu7x:2x2x1
jax: 0.10.0
libtpu: 0.0.40
codegen_flags: <defaults>
</compile_context>

<pallas_src>
import functools
import math

import numpy as np

import jax
import jax.numpy as jnp
from jax.experimental import pallas as pl
from jax.experimental.pallas import tpu as pltpu


def _round_up(x, m):
    return (x + m - 1) // m * m


# ----------------------- fused per-layer kernel:  out = (A @ X W_l) / deg + X W_r + b ---------

def _sage_layer_kernel(blk_ids_ref, num_blk_ref,            # scalar-prefetch (SMEM)
                       a_ref, xs_ref, xd_ref, invd_ref,     # tiled inputs
                       wl_ref, wr_ref, b_ref,               # resident weights
                       o_ref, acc_ref, *, apply_relu):
    i = pl.program_id(0)          # dst tile
    k = pl.program_id(1)          # position in this dst tile's nonzero-src-block list

    @pl.when(k == 0)
    def _init():
        acc_ref[...] = jnp.zeros_like(acc_ref)

    @pl.when(k < num_blk_ref[i])
    def _accumulate():
        # project this src tile in-kernel (redundant per dst tile but hidden under the A stream)
        h_k = jnp.dot(xs_ref[...], wl_ref[...],
                      preferred_element_type=jnp.float32).astype(xs_ref.dtype)
        a_bf = a_ref[...].astype(xs_ref.dtype)       # int8 edge counts -> bf16 on the VPU
        acc_ref[...] += jnp.dot(a_bf, h_k, preferred_element_type=jnp.float32)

    @pl.when(k == pl.num_programs(1) - 1)
    def _finalize():
        s = jnp.dot(xd_ref[...], wr_ref[...], preferred_element_type=jnp.float32) + b_ref[...]
        out = acc_ref[...] * invd_ref[...] + s        # exact f32 mean normalization
        if apply_relu:
            out = jnp.maximum(out, 0.0)
        o_ref[...] = out.astype(o_ref.dtype)


def sage_conv_fused(blk_ids, num_blk, a_i8, x_p, inv_deg, w_l_p, w_r_p, b_p,
                    *, tm, tk, apply_relu, out_dtype):
    """One SAGEConv layer on padded operands (single fused pallas_call)."""
    n_pad, f_pad = x_p.shape
    h_pad = b_p.shape[1]
    n_dst = n_pad // tm
    max_blk = blk_ids.shape[1]
    kernel = functools.partial(_sage_layer_kernel, apply_relu=apply_relu)
    return pl.pallas_call(
        kernel,
        out_shape=jax.ShapeDtypeStruct((n_pad, h_pad), out_dtype),
        grid_spec=pltpu.PrefetchScalarGridSpec(
            num_scalar_prefetch=2,
            grid=(n_dst, max_blk),
            in_specs=[
                # A tile (int8 counts), src-block index comes from the prefetched list
                pl.BlockSpec((tm, tk), lambda i, k, blk, nbl: (i, blk[i, k])),
                # X rows for that src block (streamed along the reduction)
                pl.BlockSpec((tk, f_pad), lambda i, k, blk, nbl: (blk[i, k], 0)),
                # X rows for the dst tile (resident over k, used for the self term)
                pl.BlockSpec((tm, f_pad), lambda i, k, blk, nbl: (i, 0)),
                # per-dst-row 1/deg (f32 column)
                pl.BlockSpec((tm, 1), lambda i, k, blk, nbl: (i, 0)),
                # W_l, W_r, b stay resident in VMEM
                pl.BlockSpec((f_pad, h_pad), lambda i, k, blk, nbl: (0, 0)),
                pl.BlockSpec((f_pad, h_pad), lambda i, k, blk, nbl: (0, 0)),
                pl.BlockSpec((1, h_pad), lambda i, k, blk, nbl: (0, 0)),
            ],
            out_specs=pl.BlockSpec((tm, h_pad), lambda i, k, blk, nbl: (i, 0)),
            scratch_shapes=[pltpu.VMEM((tm, h_pad), jnp.float32)],
        ),
        compiler_params=pltpu.CompilerParams(
            # dst tiles shard across the v7x megacore; src-block reduction axis is last.
            dimension_semantics=("parallel", "arbitrary"),
            # above v5e's 16 MiB default scoped limit, below v7x's 64 MiB physical VMEM.
            vmem_limit_bytes=48 * 1024 * 1024,
        ),
    )(blk_ids, num_blk, a_i8, x_p, x_p, inv_deg, w_l_p, w_r_p, b_p)


# ------------------------------------ graph preprocessing -------------------------------------

def build_graph_blocks(edge_index, n_pad, tm, tk, adj_dtype=jnp.int8):
    """Padded int8 edge-count matrix, exact f32 1/in_deg, and per-dst-tile nonzero-src-block lists."""
    src = jnp.asarray(edge_index[0], jnp.int32)
    dst = jnp.asarray(edge_index[1], jnp.int32)

    # padded edge counts, directly in the (single) padded buffer
    counts = jnp.zeros((n_pad, n_pad), jnp.int32).at[dst, src].add(1)
    a_i8 = jnp.clip(counts, 0, 127).astype(adj_dtype)

    # exact f32 in-degree (mean normalization is applied at the kernel finalize)
    deg = jnp.zeros((n_pad,), jnp.float32).at[dst].add(1.0)
    inv_deg = (1.0 / jnp.maximum(deg, 1.0)).reshape(n_pad, 1)

    # host-side block-sparsity structure
    src_np = np.asarray(jax.device_get(src)).astype(np.int64)
    dst_np = np.asarray(jax.device_get(dst)).astype(np.int64)
    n_dst, n_src = n_pad // tm, n_pad // tk
    nnz = np.zeros((n_dst, n_src), dtype=bool)
    if src_np.size:
        nnz[dst_np // tm, src_np // tk] = True
    num_blk = nnz.sum(axis=1).astype(np.int32)
    max_blk = max(int(num_blk.max()) if num_blk.size else 0, 1)
    blk_ids = np.zeros((n_dst, max_blk), dtype=np.int32)
    for i in range(n_dst):
        cols = np.flatnonzero(nnz[i])
        if cols.size:
            blk_ids[i, :cols.size] = cols
            blk_ids[i, cols.size:] = cols[-1]   # repeat last valid index -> padded steps re-DMA nothing
    return a_i8, inv_deg, jnp.asarray(blk_ids), jnp.asarray(num_blk)


# ----------------------------------------- the model ------------------------------------------

class NodeGraphSAGE:
    """JAX/Pallas port of the PyTorch NodeGraphSAGE module (inference forward)."""

    def __init__(self, num_features, num_classes, hidden_channels, num_layers, key,
                 tile_m=512, tile_k=2048, adj_dtype=jnp.int8, act_dtype=jnp.bfloat16):
        self.num_layers = num_layers
        self.num_classes = num_classes
        self.tile_m = tile_m
        self.tile_k = tile_k
        self.node_pad = int(math.lcm(tile_m, tile_k))
        self.adj_dtype = adj_dtype
        self.act_dtype = act_dtype
        self.dims = [num_features] + [hidden_channels] * (num_layers - 1) + [num_classes]
        self.padded_dims = [_round_up(d, 128) for d in self.dims]
        self._graph_cache = None   # graph structure is static across layers/calls; rebuild lazily

        self.params_f32 = []   # unpadded f32 (w_l, w_r, b) -- reference / export only
        self.layers = []       # padded kernel operands (w_l bf16, w_r bf16, b f32)
        for li in range(num_layers):
            fin, fout = self.dims[li], self.dims[li + 1]
            fpin, fpout = self.padded_dims[li], self.padded_dims[li + 1]
            key, k1, k2, k3 = jax.random.split(key, 4)
            bound = 1.0 / math.sqrt(float(fin))
            w_l = jax.random.uniform(k1, (fin, fout), jnp.float32, -bound, bound)
            w_r = jax.random.uniform(k2, (fin, fout), jnp.float32, -bound, bound)
            b = jax.random.uniform(k3, (1, fout), jnp.float32, -bound, bound)
            self.params_f32.append((w_l, w_r, b))
            w_l_p = jnp.zeros((fpin, fpout), jnp.float32).at[:fin, :fout].set(w_l)
            w_r_p = jnp.zeros((fpin, fpout), jnp.float32).at[:fin, :fout].set(w_r)
            b_p = jnp.zeros((1, fpout), jnp.float32).at[:, :fout].set(b)
            self.layers.append((w_l_p.astype(act_dtype), w_r_p.astype(act_dtype), b_p))

    # TODO(synk): cache key uses object identity of edge_index; a content hash would also
    #             dedupe across distinct-but-equal arrays.
    def _prepare_graph(self, edge_index, num_nodes):
        cache_key = (id(edge_index), int(num_nodes), self.tile_m, self.tile_k)
        if self._graph_cache is not None and self._graph_cache[0] == cache_key:
            return self._graph_cache[1]
        n_pad = _round_up(num_nodes, self.node_pad)
        graph = (n_pad,) + build_graph_blocks(edge_index, n_pad, self.tile_m, self.tile_k,
                                              self.adj_dtype)
        self._graph_cache = (cache_key, graph)
        return graph

    def forward(self, x, edge_index, return_node_emb=False, embedding_layer=None):
        num_nodes, num_feat = x.shape
        n_pad, a_i8, inv_deg, blk_ids, num_blk = self._prepare_graph(edge_index, num_nodes)

        x_p = jnp.zeros((n_pad, self.padded_dims[0]), self.act_dtype)
        x_p = x_p.at[:num_nodes, :num_feat].set(x.astype(self.act_dtype))

        embeddings = []
        for li, (w_l_p, w_r_p, b_p) in enumerate(self.layers):
            is_last = li == self.num_layers - 1
            out_dtype = jnp.float32 if is_last else self.act_dtype
            x_p = sage_conv_fused(
                blk_ids, num_blk, a_i8, x_p, inv_deg, w_l_p, w_r_p, b_p,
                tm=self.tile_m, tk=self.tile_k,
                apply_relu=not is_last, out_dtype=out_dtype)
            if not is_last:
                # TODO(synk): F.dropout(p=0.5) only applies in training mode; inference skips it.
                embeddings.append(x_p[:num_nodes, :self.dims[li + 1]].astype(jnp.float32))

        out = x_p[:num_nodes, :self.num_classes]
        if return_node_emb:
            if embedding_layer is not None:
                if embedding_layer >= len(embeddings):
                    raise ValueError(
                        f"embedding_layer {embedding_layer} is too large. "
                        f"Max value is {len(embeddings) - 1}")
                return out, embeddings[embedding_layer]
            return out, embeddings[-1]
        return out


# ------------------------------------- references (tests) -------------------------------------

def _mirrored_reference(model, x, edge_index):
    """Pure-JAX reference mirroring the kernel's dtype/ordering (bf16 operands, f32 acc,
    exact edge counts + f32 1/deg finalize)."""
    num_nodes = x.shape[0]
    src, dst = edge_index[0], edge_index[1]
    counts = jnp.zeros((num_nodes, num_nodes), jnp.float32).at[dst, src].add(1.0)
    inv_deg = 1.0 / jnp.maximum(counts.sum(axis=1, keepdims=True), 1.0)
    act = x.astype(model.act_dtype)
    for li, (w_l, w_r, b) in enumerate(model.params_f32):
        is_last = li == model.num_layers - 1
        xf = act.astype(jnp.float32)
        wl = w_l.astype(model.act_dtype).astype(jnp.float32)
        wr = w_r.astype(model.act_dtype).astype(jnp.float32)
        h = (xf @ wl).astype(model.act_dtype).astype(jnp.float32)
        s = xf @ wr + b
        out = (counts @ h) * inv_deg + s
        if not is_last:
            out = jnp.maximum(out, 0.0)
            act = out.astype(model.act_dtype)
        else:
            act = out
    return act


def _f32_reference(model, x, edge_index):
    """Straight PyG-order f32 reference: out = (A @ X) @ W_l + X @ W_r + b."""
    num_nodes = x.shape[0]
    src, dst = edge_index[0], edge_index[1]
    a = jnp.zeros((num_nodes, num_nodes), jnp.float32).at[dst, src].add(1.0)
    a = a / jnp.maximum(a.sum(axis=1, keepdims=True), 1.0)
    h = x
    for li, (w_l, w_r, b) in enumerate(model.params_f32):
        h = (a @ h) @ w_l + h @ w_r + b
        if li < model.num_layers - 1:
            h = jnp.maximum(h, 0.0)
    return h


if __name__ == "__main__":
    key = jax.random.PRNGKey(0)
    k_x, k_e1, k_e2, k_params = jax.random.split(key, 4)

    num_nodes = 300          # not a tile multiple -> exercises node padding
    num_features = 16
    hidden_channels = 32
    num_classes = 4
    num_layers = 3
    num_edges = 1200

    x = jax.random.normal(k_x, (num_nodes, num_features), jnp.float32)
    src = jax.random.randint(k_e1, (num_edges,), 0, num_nodes, jnp.int32)
    dst = jax.random.randint(k_e2, (num_edges,), 0, num_nodes, jnp.int32)
    edge_index = jnp.stack([src, dst], axis=0)  # (2, E): row 0 = source, row 1 = target

    # Small tiles so the 300-node demo runs a real (dst, src-block) grid, exercises the f32 VMEM
    # accumulator and the block-sparse skip of all-padding tiles; production defaults
    # (tile_m=512, tile_k=2048, ~5 MiB working set) target the HBM-bound regime on v5e/v6e/v7x.
    model = NodeGraphSAGE(num_features, num_classes, hidden_channels, num_layers,
                          k_params, tile_m=128, tile_k=256)

    out = jax.block_until_ready(model.forward(x, edge_index))
    assert out.shape == (num_nodes, num_classes)
    assert out.dtype == jnp.float32

    # tight check vs a reference with identical dtype/ordering choices (bf16 rounding only)
    ref = _mirrored_reference(model, x, edge_index)
    assert jnp.allclose(out, ref, atol=2e-3, rtol=2e-3), float(jnp.max(jnp.abs(out - ref)))

    # loose check vs the straight f32 PyTorch-order reference
    ref32 = _f32_reference(model, x, edge_index)
    assert jnp.allclose(out, ref32, atol=1e-1, rtol=1e-1), float(jnp.max(jnp.abs(out - ref32)))

    # exercise the return_node_emb path (second call also hits the cached graph preprocessing)
    logits, emb = model.forward(x, edge_index, return_node_emb=True, embedding_layer=0)
    jax.block_until_ready(logits)
    jax.block_until_ready(emb)
    assert emb.shape == (num_nodes, hidden_channels)

    print("KERNEL_OK")
</pallas_src>

<mosaic_0001>
module attributes {stable_mosaic.version = 11 : i64} {
  func.func @_sage_layer_kernel(%arg0: i32, %arg1: i32, %arg2: memref<4x2xi32, #tpu.memory_space<smem>>, %arg3: memref<4xi32, #tpu.memory_space<smem>>, %arg4: memref<128x256xi8, #tpu.memory_space<vmem>>, %arg5: memref<256x128xbf16, #tpu.memory_space<vmem>>, %arg6: memref<128x128xbf16, #tpu.memory_space<vmem>>, %arg7: memref<128x1xf32, #tpu.memory_space<vmem>>, %arg8: memref<128x128xbf16, #tpu.memory_space<vmem>>, %arg9: memref<128x128xbf16, #tpu.memory_space<vmem>>, %arg10: memref<1x128xf32, #tpu.memory_space<vmem>>, %arg11: memref<128x128xbf16, #tpu.memory_space<vmem>>, %arg12: memref<128x128xf32, #tpu.memory_space<vmem>>) attributes {dimension_semantics = [#tpu.dimension_semantics<parallel>, #tpu.dimension_semantics<arbitrary>], iteration_bounds = array<i64: 4, 2>, scalar_prefetch = 2 : i64, scratch_operands = 1 : i64, tpu.core_type = #tpu.core_type<tc>, window_params = [{transform_indices = @transform_0, window_bounds = array<i64: 128, 256>}, {transform_indices = @transform_1, window_bounds = array<i64: 256, 128>}, {transform_indices = @transform_2, window_bounds = array<i64: 128, 128>}, {transform_indices = @transform_3, window_bounds = array<i64: 128, 1>}, {pipeline_mode = #tpu.pipeline_mode<synchronous>, transform_indices = @transform_4, window_bounds = array<i64: 128, 128>}, {pipeline_mode = #tpu.pipeline_mode<synchronous>, transform_indices = @transform_5, window_bounds = array<i64: 128, 128>}, {pipeline_mode = #tpu.pipeline_mode<synchronous>, transform_indices = @transform_6, window_bounds = array<i64: 1, 128>}, {transform_indices = @transform_7, window_bounds = array<i64: 128, 128>}]} {
    %c0_i32 = arith.constant 0 : i32
    %0 = arith.cmpi eq, %arg1, %c0_i32 : i32
    %1 = arith.extui %0 : i1 to i32
    %c0_i32_0 = arith.constant 0 : i32
    %2 = arith.cmpi ne, %1, %c0_i32_0 : i32
    scf.if %2 {
      %cst = arith.constant 0.000000e+00 : f32
      %11 = vector.broadcast %cst : f32 to vector<128x128xf32>
      %c0 = arith.constant 0 : index
      %c0_3 = arith.constant 0 : index
      %12 = vector.load %arg12[%c0, %c0_3] : memref<128x128xf32, #tpu.memory_space<vmem>>, vector<128x128xf32>
      tpu.vector_store %arg12[%c0, %c0_3], %11 {strides = array<i32>} : memref<128x128xf32, #tpu.memory_space<vmem>>, vector<128x128xf32>,
    } else {
    }
    %3 = arith.index_cast %arg0 : i32 to index
    %4 = memref.load %arg3[%3] : memref<4xi32, #tpu.memory_space<smem>>
    %5 = arith.cmpi slt, %arg1, %4 : i32
    %6 = arith.extui %5 : i1 to i32
    %c0_i32_1 = arith.constant 0 : i32
    %7 = arith.cmpi ne, %6, %c0_i32_1 : i32
    scf.if %7 {
      %c0 = arith.constant 0 : index
      %c0_3 = arith.constant 0 : index
      %11 = vector.load %arg5[%c0, %c0_3] : memref<256x128xbf16, #tpu.memory_space<vmem>>, vector<256x128xbf16>
      %c0_4 = arith.constant 0 : index
      %c0_5 = arith.constant 0 : index
      %12 = vector.load %arg8[%c0_4, %c0_5] : memref<128x128xbf16, #tpu.memory_space<vmem>>, vector<128x128xbf16>
      %cst = arith.constant dense<0.000000e+00> : vector<256x128xf32>
      %13 = tpu.matmul %11, %12, %cst {dimension_numbers = #tpu.dot_dimension_numbers<[1], [0], [0], [1], [0, 0, 1, 1], [], []>} : vector<256x128xbf16>, vector<128x128xbf16>, vector<256x128xf32> -> vector<256x128xf32>
      %14 = arith.truncf %13 : vector<256x128xf32> to vector<256x128xbf16>
      %c0_6 = arith.constant 0 : index
      %c0_7 = arith.constant 0 : index
      %15 = vector.load %arg4[%c0_6, %c0_7] : memref<128x256xi8, #tpu.memory_space<vmem>>, vector<128x256xi8>
      %16 = arith.sitofp %15 : vector<128x256xi8> to vector<128x256xbf16>
      %c0_8 = arith.constant 0 : index
      %c0_9 = arith.constant 0 : index
      %17 = vector.load %arg12[%c0_8, %c0_9] : memref<128x128xf32, #tpu.memory_space<vmem>>, vector<128x128xf32>
      %cst_10 = arith.constant dense<0.000000e+00> : vector<128x128xf32>
      %18 = tpu.matmul %16, %14, %cst_10 {dimension_numbers = #tpu.dot_dimension_numbers<[1], [0], [0], [1], [0, 0, 1, 1], [], []>} : vector<128x256xbf16>, vector<256x128xbf16>, vector<128x128xf32> -> vector<128x128xf32>
      %19 = arith.addf %17, %18 : vector<128x128xf32>
      %c0_11 = arith.constant 0 : index
      %c0_12 = arith.constant 0 : index
      %20 = vector.load %arg12[%c0_11, %c0_12] : memref<128x128xf32, #tpu.memory_space<vmem>>, vector<128x128xf32>
      tpu.vector_store %arg12[%c0_11, %c0_12], %19 {strides = array<i32>} : memref<128x128xf32, #tpu.memory_space<vmem>>, vector<128x128xf32>,
    } else {
    }
    %c1_i32 = arith.constant 1 : i32
    %8 = arith.cmpi eq, %arg1, %c1_i32 : i32
    %9 = arith.extui %8 : i1 to i32
    %c0_i32_2 = arith.constant 0 : i32
    %10 = arith.cmpi ne, %9, %c0_i32_2 : i32
    scf.if %10 {
      %c0 = arith.constant 0 : index
      %c0_3 = arith.constant 0 : index
      %11 = vector.load %arg6[%c0, %c0_3] : memref<128x128xbf16, #tpu.memory_space<vmem>>, vector<128x128xbf16>
      %c0_4 = arith.constant 0 : index
      %c0_5 = arith.constant 0 : index
      %12 = vector.load %arg9[%c0_4, %c0_5] : memref<128x128xbf16, #tpu.memory_space<vmem>>, vector<128x128xbf16>
      %cst = arith.constant dense<0.000000e+00> : vector<128x128xf32>
      %13 = tpu.matmul %11, %12, %cst {dimension_numbers = #tpu.dot_dimension_numbers<[1], [0], [0], [1], [0, 0, 1, 1], [], []>} : vector<128x128xbf16>, vector<128x128xbf16>, vector<128x128xf32> -> vector<128x128xf32>
      %c0_6 = arith.constant 0 : index
      %c0_7 = arith.constant 0 : index
      %14 = vector.load %arg10[%c0_6, %c0_7] : memref<1x128xf32, #tpu.memory_space<vmem>>, vector<1x128xf32>
      %15 = vector.broadcast %14 : vector<1x128xf32> to vector<128x128xf32>
      %16 = arith.addf %13, %15 : vector<128x128xf32>
      %c0_8 = arith.constant 0 : index
      %c0_9 = arith.constant 0 : index
      %17 = vector.load %arg12[%c0_8, %c0_9] : memref<128x128xf32, #tpu.memory_space<vmem>>, vector<128x128xf32>
      %c0_10 = arith.constant 0 : index
      %c0_11 = arith.constant 0 : index
      %18 = vector.load %arg7[%c0_10, %c0_11] : memref<128x1xf32, #tpu.memory_space<vmem>>, vector<128x1xf32>
      %19 = vector.broadcast %18 : vector<128x1xf32> to vector<128x128xf32>
      %20 = arith.mulf %17, %19 : vector<128x128xf32>
      %21 = arith.addf %20, %16 : vector<128x128xf32>
      %cst_12 = arith.constant 0.000000e+00 : f32
      %22 = vector.broadcast %cst_12 : f32 to vector<128x128xf32>
      %23 = arith.maximumf %21, %22 : vector<128x128xf32>
      %24 = arith.truncf %23 : vector<128x128xf32> to vector<128x128xbf16>
      %c0_13 = arith.constant 0 : index
      %c0_14 = arith.constant 0 : index
      %25 = vector.load %arg11[%c0_13, %c0_14] : memref<128x128xbf16, #tpu.memory_space<vmem>>, vector<128x128xbf16>
      tpu.vector_store %arg11[%c0_13, %c0_14], %24 {strides = array<i32>} : memref<128x128xbf16, #tpu.memory_space<vmem>>, vector<128x128xbf16>,
    } else {
    }
    return
  }
  func.func @transform_0(%arg0: i32, %arg1: i32, %arg2: memref<4x2xi32, #tpu.memory_space<smem>>, %arg3: memref<4xi32, #tpu.memory_space<smem>>) -> (i32, i32) {
    %0 = arith.index_cast %arg0 : i32 to index
    %1 = arith.index_cast %arg1 : i32 to index
    %2 = memref.load %arg2[%0, %1] : memref<4x2xi32, #tpu.memory_space<smem>>
    %c0_i32 = arith.constant 0 : i32
    return %arg0, %2 : i32, i32
  }
  func.func @transform_1(%arg0: i32, %arg1: i32, %arg2: memref<4x2xi32, #tpu.memory_space<smem>>, %arg3: memref<4xi32, #tpu.memory_space<smem>>) -> (i32, i32) {
    %0 = arith.index_cast %arg0 : i32 to index
    %1 = arith.index_cast %arg1 : i32 to index
    %2 = memref.load %arg2[%0, %1] : memref<4x2xi32, #tpu.memory_space<smem>>
    %c0_i32 = arith.constant 0 : i32
    %c0_i32_0 = arith.constant 0 : i32
    return %2, %c0_i32 : i32, i32
  }
  func.func @transform_2(%arg0: i32, %arg1: i32, %arg2: memref<4x2xi32, #tpu.memory_space<smem>>, %arg3: memref<4xi32, #tpu.memory_space<smem>>) -> (i32, i32) {
    %c0_i32 = arith.constant 0 : i32
    %c0_i32_0 = arith.constant 0 : i32
    return %arg0, %c0_i32 : i32, i32
  }
  func.func @transform_3(%arg0: i32, %arg1: i32, %arg2: memref<4x2xi32, #tpu.memory_space<smem>>, %arg3: memref<4xi32, #tpu.memory_space<smem>>) -> (i32, i32) {
    %c0_i32 = arith.constant 0 : i32
    %c0_i32_0 = arith.constant 0 : i32
    return %arg0, %c0_i32 : i32, i32
  }
  func.func @transform_4(%arg0: i32, %arg1: i32, %arg2: memref<4x2xi32, #tpu.memory_space<smem>>, %arg3: memref<4xi32, #tpu.memory_space<smem>>) -> (i32, i32) {
    %c0_i32 = arith.constant 0 : i32
    %c0_i32_0 = arith.constant 0 : i32
    %c0_i32_1 = arith.constant 0 : i32
    return %c0_i32, %c0_i32_0 : i32, i32
  }
  func.func @transform_5(%arg0: i32, %arg1: i32, %arg2: memref<4x2xi32, #tpu.memory_space<smem>>, %arg3: memref<4xi32, #tpu.memory_space<smem>>) -> (i32, i32) {
    %c0_i32 = arith.constant 0 : i32
    %c0_i32_0 = arith.constant 0 : i32
    %c0_i32_1 = arith.constant 0 : i32
    return %c0_i32, %c0_i32_0 : i32, i32
  }
  func.func @transform_6(%arg0: i32, %arg1: i32, %arg2: memref<4x2xi32, #tpu.memory_space<smem>>, %arg3: memref<4xi32, #tpu.memory_space<smem>>) -> (i32, i32) {
    %c0_i32 = arith.constant 0 : i32
    %c0_i32_0 = arith.constant 0 : i32
    %c0_i32_1 = arith.constant 0 : i32
    return %c0_i32, %c0_i32_0 : i32, i32
  }
  func.func @transform_7(%arg0: i32, %arg1: i32, %arg2: memref<4x2xi32, #tpu.memory_space<smem>>, %arg3: memref<4xi32, #tpu.memory_space<smem>>) -> (i32, i32) {
    %c0_i32 = arith.constant 0 : i32
    %c0_i32_0 = arith.constant 0 : i32
    return %arg0, %c0_i32 : i32, i32
  }
}

</mosaic_0001>

<bundles_post_ra>
// kernel: tpu_custom_call.1
= control target key start
LH: loop header
LB: loop body
LE: loop exit
PB: predicated region body
PF: predicated region fallthrough
CT: control target
= control target key end

     0   :  { %s3200_s0 = inlined_call_operand.vmem [shape: s32[4,2], index: 0, kind: input, shape index: {}]   ;;  %s3201_s2 = inlined_call_operand.vmem [shape: s8[512,512], index: 2, kind: input, shape index: {}]   ;;  %s3202_s3 = inlined_call_operand.hbm [shape: bf16[512,128], index: 3, kind: input, shape index: {}]   ;;  %s3203_s4 = inlined_call_operand.hbm [shape: bf16[512,128], index: 4, kind: input, shape index: {}]   ;;  %s3204_s5 = inlined_call_operand.vmem [shape: f32[512,1], index: 5, kind: input, shape index: {}]   ;;  %s3205_s6 = inlined_call_operand.hbm [shape: bf16[128,128], index: 6, kind: input, shape index: {}]   ;;  %s3206_s7 = inlined_call_operand.hbm [shape: bf16[128,128], index: 7, kind: input, shape index: {}]   ;;  %s3207_s8 = inlined_call_operand.vmem [shape: f32[1,128], index: 8, kind: input, shape index: {}]   ;;  %s3208_s9 = inlined_call_operand.hbm [shape: bf16[512,128], index: 9, kind: output, shape index: {}]   ;;  %s3209_s1 = inlined_call_operand.vmem [shape: s32[4], index: 1, kind: input, shape index: {}]  }
   0x1   :  { %3231 = sst [smem:[#allocation38_spill]] %s3201_s2  ;;  %s14_s11 = sshll.u32 %s3200_s0, 4  ;;  %s15_s11 = int_to_ptr.vmem [resolvable:$true] %s14_s11 }
   0x2   :  { %3232 = sst [smem:[#allocation39_spill]] %s3204_s5  ;;  %s18_s14 = sshll.u32 %s3209_s1, 4  ;;  %s19_s14 = int_to_ptr.vmem [resolvable:$true] %s18_s14 }
   0x3   :  { %3233 = sst [smem:[#allocation40_spill]] %s3207_s8  ;;  %s2307_s15 = scalar_lea.vmem %s15_s11, 64 }
   0x4   :  { %3234 = sst [smem:[#allocation41_spill]] %s3208_s9  ;;  %p2308_p0 = scmp.ne.s32.totalorder %s15_s11, %s2307_s15 }
   0x5   :  { %p2312_p1 = scmp.lt.s32.totalorder %s15_s11, %s15_s11  ;;  %p2313_p2 = scmp.lt.s32.totalorder %s2307_s15, %s2307_s15 }
   0x7   :  { %p2314_p3 = por %p2313_p2, %p2312_p1 }
   0x9   :  { %p2315_p4 = pnand %p2314_p3, %p2308_p0 }
   0xb   :  { %2318 = shalt.err (!%p2315_p4)  }
   0xc   :  { %s2597_s16 = smov [#allocation4]   ;;  %s2319_s17 = scalar_lea.vmem %s19_s14, 16 }
   0xd   :  { %17 = dma.vmem_to_smem %s15_s11, 64, %s2597_s16, [#allocation3] }
   0xe   :  { %p2320_p5 = scmp.ne.s32.totalorder %s19_s14, %s2319_s17  ;;  %p2324_p6 = scmp.lt.s32.totalorder %s19_s14, %s19_s14 }
   0xf   :  { %p2325_p7 = scmp.lt.s32.totalorder %s2319_s17, %s2319_s17 }
  0x11   :  { %p2326_p8 = por %p2325_p7, %p2324_p6 }
  0x13   :  { %p2327_p9 = pnand %p2326_p8, %p2320_p5 }
  0x15   :  { %2330 = shalt.err (!%p2327_p9)  }
  0x16   :  { %s2598_s0 = smov [#allocation5]  }
  0x17   :  { %21 = dma.vmem_to_smem %s19_s14, 16, %s2598_s0, [#allocation3] }
  0x18   :  { %2523 = dma.done.wait [#allocation3], 80 }
  0x19   :  { %2524 = vsyncadd [#allocation3], 4294967216 }
  0x1a   :  { %23 = sfence }
  0x1b   :  { %24 = vsyncpa [#allocation8], 0 }
  0x1c   :  { %26 = vsyncpa [#allocation8 + $0x1], 0 }
  0x1d   :  { %27 = vsyncpa [#allocation11], 0 }
  0x1e   :  { %29 = vsyncpa [#allocation11 + $0x1], 0 }
  0x1f   :  { %30 = vsyncpa [#allocation14], 0 }
  0x20   :  { %31 = vsyncpa [#allocation9], 0 }
  0x21   :  { %33 = vsyncpa [#allocation9 + $0x1], 0  ;;  %s2668_s1 = smov 0   ;;  %s2670_s18 = smov 0  }
  0x22   :  { %s2672_s19 = smov 0   ;;  %s2674_s20 = smov 0  }
  0x23   :  { %s2676_s21 = smov 0   ;;  %s2678_s22 = smov 0  }
  0x24   :  { %s2680_s23 = smov 0   ;;  %s2682_s24 = smov 0  }
  0x25   :  { %s2684_s25 = smov 0   ;;  %s2686_s26 = smov 0  }
  0x26   :  { %s2688_s27 = smov 0   ;;  %s2690_s28 = smov 0  }
  0x27   :  { %s2692_s29 = smov 0  }
  0x28 LB: > { %3235 = sst [smem:[#allocation23_spill]] %s2547_s1  ;;  %s2734_s30 = sadd.s32 4294967295, %s2595_s29   ;;  %s2595_s29 = sphi %s2692_s29, %s39_s29   ;;  %s2591_s28 = sphi %s2690_s28, %s3307_s28   ;;  %s2587_s27 = sphi %s2688_s27, %s3297_s27   ;;  %s2583_s26 = sphi %s2686_s26, %s3306_s26   ;;  %s2579_s25 = sphi %s2684_s25, %s3296_s25   ;;  %s2575_s24 = sphi %s2682_s24, %s3305_s24   ;;  %s2571_s23 = sphi %s2680_s23, %s3304_s23   ;;  %s2567_s22 = sphi %s2678_s22, %s3303_s22   ;;  %s2563_s21 = sphi %s2676_s21, %s3302_s21   ;;  %s2559_s20 = sphi %s2674_s20, %s3293_s20   ;;  %s2555_s19 = sphi %s2672_s19, %s3301_s19   ;;  %s2551_s18 = sphi %s2670_s18, %s3300_s18   ;;  %s2547_s1 = sphi %s2668_s1, %s3299_s1  }
  0x29   : > { %3236 = sst [smem:[#allocation24_spill]] %s2563_s21  ;;  %s48_s11 = sadd.s32 1, %s2587_s27 }
  0x2a   : > { %3237 = sst [smem:[#allocation25_spill]] %s2571_s23  ;;  %s51_s12 = sadd.s32 1, %s2591_s28 }
  0x2b   : > { %3238 = sst [smem:[#allocation26_spill]] %s2579_s25  ;;  %p49_p10 = scmp.ge.s32.totalorder %s48_s11, 2 }
  0x2c   : > { %3239 = sst [smem:[#allocation27_spill]] %s2583_s26  ;;  %s55_s13 = sshra.s32 %s2587_s27, 7 }
  0x2d   : > { %3240 = sst [smem:[#allocation28_spill]] %s2587_s27  ;;  %s57_s14 = sadd.s32 %s2591_s28, %s55_s13 }
  0x2e   : > { %s60_s15 = sand.u32 127, %s2587_s27  ;;  %s3309_s11 = smov (%p49_p10, %s48_s11), 0 }
  0x2f   : > { %3241 = sst [smem:[#allocation29_spill]] %s3309_s11  ;;  %s3311_s12 = smov (!%p49_p10, %s51_s12), %s2591_s28 }
  0x30   : > { %s1755_s16 = sshll.u32 %s57_s14, 7  ;;  %s63_s17 = sshra.s32 %s3309_s11, 7 }
  0x31   : > { %p53_p11 = scmp.ge.s32.totalorder %s3311_s12, 4  ;;  %s2746_s0 = sadd.s32 %s1755_s16, %s60_s15 }
  0x32   : > { %s62_s10 = sld [smem:[#allocation4 + %s2746_s0]]  ;;  %s68_s13 = sand.u32 127, %s3309_s11 }
  0x33   : > { %s3313_s12 = smov (%p53_p11, %s3311_s12), 0  ;;  %s76_s14 = sadd.s32 1, %s2575_s24 }
  0x34   : > { %3242 = sst [smem:[#allocation30_spill]] %s3313_s12  ;;  %p83_p12 = scmp.ne.s32.totalorder %s2575_s24, %s2571_s23 }
  0x35   : > { %s65_s27 = sadd.s32 %s63_s17, %s3313_s12  ;;  %s71_s15 = ssub.s32 %s2591_s28, %s3313_s12 }
  0x36   : > { %s1756_s16 = sshll.u32 %s65_s27, 7  ;;  %p84_p13 = scmp.eq.s32.totalorder %s2595_s29, 0 }
  0x37   : > { %s69_s9 = sadd.s32 %s1756_s16, %s68_s13  ;;  %s106_s11 = sld [smem:[#allocation4 + %s2746_s0]] }
  0x38   : > { %s70_s8 = sld [smem:[#allocation4 + %s69_s9]]  ;;  %p2762_p0 = por %p84_p13, %p83_p12 }
  0x39   : > { %s114_s5 = sld [smem:[#allocation4 + %s69_s9]]  ;;  %s118_s26 = sadd.s32 1, %s2567_s22 }
  0x3a   : > { %s3243_s25 = scalar_select %p2762_p0, 1, 0 }
  0x3b   : > { %p125_p1 = scmp.ne.s32.totalorder %s2567_s22, %s2563_s21  ;;  %p131_p2 = scmp.ne.s32.totalorder %s2563_s21, %s2559_s20 }
  0x3c   : > { %p3219_p3 = scmp.eq.s32.totalorder %s2734_s30, 0  ;;  %p142_p4 = scmp.eq.s32.totalorder %s71_s15, 0 }
  0x3d   : > { %p2774_p5 = por %p125_p1, %p84_p13  ;;  %s144_s9 = sadd.s32 1, %s2555_s19 }
  0x3e   : > { %p2781_p6 = por %p3219_p3, %p131_p2  ;;  %p151_p7 = scmp.ne.s32.totalorder %s2555_s19, %s2551_s18 }
  0x3f   : > { %s3244_s27 = scalar_select %p2774_p5, 1, 0 }
  0x40   : > { %s3245_s20 = scalar_select %p2781_p6, 1, 0 }
  0x41   : > { %s72_s17 = ssub.s32 %s62_s10, %s70_s8  ;;  %p157_p8 = scmp.ne.s32.totalorder %s2551_s18, %s2547_s1 }
  0x42   : > { %3246 = sst [smem:[#allocation31_spill]] %s3245_s20  ;;  %s73_s13 = sor.u32 %s72_s17, %s71_s15 }
  0x43   : > { %s115_s16 = ssub.s32 %s106_s11, %s114_s5  ;;  %p74_p9 = scmp.eq.s32.totalorder %s73_s13, 0 }
  0x44   : > { %p116_p10 = scmp.eq.s32.totalorder %s115_s16, 0  ;;  %p2803_p11 = por %p151_p7, %p84_p13 }
  0x45   : > { %s2790_s12 = scalar_select %p142_p4, %s2555_s19, %s144_s9  }
  0x46   : > { %s2793_s21 = scalar_select %p74_p9, %s2575_s24, %s76_s14  }
  0x47   : > { %3247 = sst [smem:[#allocation32_spill]] %s2790_s12  ;;  %p2812_p12 = por %p157_p8, %p3219_p3 }
  0x48   : > { %3248 = sst [smem:[#allocation33_spill]] %s2793_s21  ;;  %p270_p1 = scmp.eq.s32.totalorder %s2734_s30, 7 }
  0x49   : > { %s2796_s23 = scalar_select %p116_p10, %s2567_s22, %s118_s26  }
  0x4a   : > { %s3250_s20 = scalar_select %p2803_p11, 1, 0 }
  0x4b   : > { %3249 = sst [smem:[#allocation34_spill]] %s2796_s23  ;;  %s3253_s5 = sadd.s32 4294967294, %s2595_s29  }
  0x4c   : > { %s3251_s8 = scalar_select %p2812_p12, 1, 0 }
  0x4d   : > { %p276_p2 = scmp.eq.s32.totalorder %s3253_s5, 7  ;;  %p1759_p4 = scmp.ge.s32.totalorder %s2595_s29, 1 }
  0x4e   : > { %3252 = sst [smem:[#allocation35_spill]] %s3251_s8  ;;  %p283_p9 = scmp.lt.s32.totalorder %s2595_s29, 9 }
  0x4f   : > { %p2824_p10 = por %p270_p1, %p151_p7  ;;  %p2831_p13 = por %p276_p2, %p157_p8 }
  0x50   : > { %p2835_p6 = pnand %p1759_p4, %p283_p9  ;;  %s2599_s14 = smov [#allocation12]  }
  0x51   : > { %s3254_s26 = scalar_select %p2824_p10, 1, 0 }
  0x52   : > { %s3256_s10 = scalar_select %p2831_p13, 1, 0 }
  0x53   : > { %3255 = sst [smem:[#allocation36_spill]] %s3254_s26  ;;  %p2133_p3 = pneg %p2835_p6 }
  0x54   : > { %3257 = sst [smem:[#allocation37_spill]] %s3256_s10  ;;  %s295_s15 = sshll.u32 %s2599_s14, 4  ;;  %s296_s15 = int_to_ptr.vmem [resolvable:$true] %s295_s15 }
  0x55   : > { %s3258_s11 = scalar_select %p2835_p6, 1, 0 }
  0x56   : > { %p3259_p12 = scmp.eq.s32.totalorder %s2734_s30, 0  ;;  %s2600_s17 = smov [#allocation13]  }
  0x57   : > { %s308_s13 = sshll.u32 %s2600_s17, 4  ;;  %s2331_s21 = scalar_lea.hbm %s3205_s6, 1024  ;;  %s2847_s13 = int_to_ptr.vmem [resolvable:$true] %s308_s13 }
  0x58   : > { %p2843_p7 = pnand %p2133_p3, %p3259_p12  ;;  %p2332_p8 = scmp.ne.s32.totalorder %s3205_s6, %s2331_s21 }
  0x59   : > { %p2338_p2 = scmp.lt.u32.totalorder %s2331_s21, %s3205_s6 }
  0x5a   : > { %p2333_p1 = pneg %p2843_p7 }
  0x5c   : > { %p2334_p3 = pnand %p2333_p1, %p2332_p8 }
  0x5e   : > { %p2335_p12 = pneg %p2334_p3 }
  0x60   : > { %p2340_p4 = pnand %p2338_p2, %p2335_p12 }
  0x62   : > { %2343 = shalt.err (!%p2340_p4)
}
  0x63   : > { %s2344_s17 = scalar_lea.vmem %s296_s15, 1024  ;;  %p2352_p6 = scmp.lt.s32.totalorder %s296_s15, %s296_s15 }
  0x64   : > { %p2345_p9 = scmp.ne.s32.totalorder %s296_s15, %s2344_s17  ;;  %p2353_p11 = scmp.lt.s32.totalorder %s2344_s17, %s2344_s17 }
  0x66   : > { %p2347_p13 = pnand %p2345_p9, %p2333_p1  ;;  %p2354_p5 = por %p2353_p11, %p2352_p6 }
  0x68   : > { %p2348_p10 = pneg %p2347_p13 }
  0x6a   : > { %p2355_p0 = pnand %p2354_p5, %p2348_p10 }
  0x6c   : > { %2358 = shalt.err (!%p2355_p0)
}
  0x6d   : > { %s2601_s23 = smov 64   ;;  %s2602_s12 = smov 4  }
  0x6e   : > { %2136 = dma.hbm_to_vmem [thread:$0]  (!%p2843_p7), %s3205_s6, 1024, %s296_s15, [#allocation11], %s2601_s23, %s2601_s23, %s2602_s12  }
  0x6f   : > { %s2359_s14 = scalar_lea.hbm %s3206_s7, 1024 }
  0x70   : > { %p2360_p13 = scmp.ne.s32.totalorder %s3206_s7, %s2359_s14  ;;  %p2366_p6 = scmp.lt.u32.totalorder %s2359_s14, %s3206_s7 }
  0x72   : > { %p2362_p0 = pnand %p2360_p13, %p2333_p1 }
  0x74   : > { %p2363_p5 = pneg %p2362_p0 }
  0x76   : > { %p2368_p11 = pnand %p2366_p6, %p2363_p5 }
  0x78   : > { %2371 = shalt.err (!%p2368_p11)
}
  0x79   : > { %s2372_s15 = scalar_lea.vmem %s2847_s13, 1024  ;;  %p2380_p12 = scmp.lt.s32.totalorder %s2847_s13, %s2847_s13 }
  0x7a   : > { %p2373_p10 = scmp.ne.s32.totalorder %s2847_s13, %s2372_s15  ;;  %p2381_p2 = scmp.lt.s32.totalorder %s2372_s15, %s2372_s15 }
  0x7c   : > { %p2375_p8 = pnand %p2373_p10, %p2333_p1  ;;  %p2382_p4 = por %p2381_p2, %p2380_p12 }
  0x7e   : > { %p2376_p3 = pneg %p2375_p8 }
  0x80   : > { %p2383_p9 = pnand %p2382_p4, %p2376_p3 }
  0x82   : > { %2386 = shalt.err (!%p2383_p9)
}
  0x83   : > { %2139 = dma.hbm_to_vmem [thread:$0]  (!%p2843_p7), %s3206_s7, 1024, %s2847_s13, [#allocation14], %s2601_s23, %s2601_s23, %s2602_s12  }
  0x84   : > { %p1762_p13 = scmp.ge.s32.totalorder %s2595_s29, 8 }
  0x85   : > { %p3261_p0 = scmp.ne.s32.totalorder (!%p1762_p13), %s3243_s25, 0 }
  0x86   : > { %321 = sbr.rel (%p1762_p13) target bundleno = 213 (0xd5), region = 28 }
  0x8d   : > { %324 = sbr.rel (!%p3261_p0) target bundleno = 156 (0x9c), region = 32  ;;  %s336_s26 = sld [smem:[#allocation4 + %s2746_s0]] (%p3261_p0) }
  0x8e   : > { %s326_s21 = sand.u32 (%p3261_p0), 1, %s2575_s24   ;;  %s1850_s10 = sshll.u32 (%p3261_p0), %s2591_s28, 4 }
  0x8f   : > { %s1763_s16 = sshll.u32 (%p3261_p0), %s326_s21, 6  ;;  %s3262_s2 = sld [smem:[#allocation38_spill]] (%p3261_p0) }
  0x90   : > { %s328_s23 = scalar_lea.vmem (%p3261_p0), [#allocation6], %s1763_s16 }
  0x93   : > { %s1766_s5 = sshll.u32 (%p3261_p0), %s336_s26, 1 }
  0x94   : > { %s340_s9 = sadd.s32 %s1850_s10, %s1766_s5 }
  0x95   : > { %s1768_s14 = sshll.u32 %s340_s9, 3 }
  0x96   : > { %s342_s13 = scalar_lea.vmem %s3262_s2, %s1768_s14 }
  0x97   : > { %v355_v0 = vld [vmem:[%s342_s13] sm:$0xff]  ;;  %v357_v1 = vld [vmem:[%s342_s13 + $0x8] sm:$0xff] }
  0x98   : > { %v359_v2 = vld [vmem:[%s342_s13 + $0x20] sm:$0xff]  ;;  %356 = vst [vmem:[%s328_s23] sm:$0xff] %v355_v0  ;;  %358 = vst [vmem:[%s328_s23 + $0x8] sm:$0xff] %v357_v1  ;;  %v361_v3 = vld [vmem:[%s342_s13 + $0x28] sm:$0xff] }
  0x99   : > { %360 = vst [vmem:[%s328_s23 + $0x10] sm:$0xff] %v359_v2  ;;  %v363_v4 = vld [vmem:[%s342_s13 + $0x40] sm:$0xff]  ;;  %v365_v5 = vld [vmem:[%s342_s13 + $0x48] sm:$0xff]  ;;  %362 = vst [vmem:[%s328_s23 + $0x18] sm:$0xff] %v361_v3 }
  0x9a   : > { %364 = vst [vmem:[%s328_s23 + $0x20] sm:$0xff] %v363_v4  ;;  %366 = vst [vmem:[%s328_s23 + $0x28] sm:$0xff] %v365_v5  ;;  %v367_v6 = vld [vmem:[%s342_s13 + $0x60] sm:$0xff]  ;;  %v369_v7 = vld [vmem:[%s342_s13 + $0x68] sm:$0xff] }
  0x9b   : > { %368 = vst [vmem:[%s328_s23 + $0x30] sm:$0xff] %v367_v6  ;;  %370 = vst [vmem:[%s328_s23 + $0x38] sm:$0xff] %v369_v7 }
  0x9c PF: > { %s377_s25 = sand.u32 1, %s2567_s22   ;;  %p3263_p7 = scmp.ne.s32.totalorder %s3244_s27, 0 }
  0x9d   : > { %s1769_s12 = sshll.u32 %s377_s25, 7  ;;  %s406_s10 = sand.u32 1, %s2595_s29  }
  0x9e   : > { %s2121_s1 = scalar_select %p3263_p7, [#allocation4], [#allocation16] }
  0x9f   : > { %s3315_s0 = smov (!%p3263_p7, %s2746_s0), 0  ;;  %s381_s26 = scalar_lea.vmem [#allocation7], %s1769_s12 }
  0xa0   : > { %s389_s8 = sld [smem:[%s2121_s1 + %s3315_s0]]  ;;  %s396_s21 = sshll.u32 %s381_s26, 4  ;;  %s2914_s21 = int_to_ptr.vmem [resolvable:$true] %s396_s21 }
  0xa1   : > { %s408_s16 = sand.u32 1, %s2555_s19   ;;  %s1852_s9 = sshll.u32 %s2591_s28, 10 }
  0xa2   : > { %s1773_s5 = sshll.u32 %s408_s16, 6  ;;  %s2919_s23 = scalar_lea.hbm %s3203_s4, %s1852_s9 }
  0xa3   : > { %s410_s14 = scalar_lea.vmem [#allocation10], %s1773_s5  ;;  %s2928_s26 = scalar_lea.sflag [#allocation8], %s377_s25 }
  0xa4   : > { %s417_s17 = sshll.u32 %s410_s14, 4  ;;  %s2391_s9 = scalar_lea.hbm %s3202_s3, 4096  ;;  %s2921_s17 = int_to_ptr.vmem [resolvable:$true] %s417_s17 }
  0xa6   : > { %s1851_s2 = sshll.u32 %s389_s8, 11 }
  0xa7   : > { %s2926_s1 = scalar_lea.hbm %s3202_s3, %s1851_s2 }
  0xa8   : > { %s2387_s16 = scalar_lea.hbm %s2926_s1, 2048  ;;  %p2392_p11 = scmp.lt.u32.totalorder %s2926_s1, %s3202_s3 }
  0xa9   : > { %p2388_p1 = scmp.ne.s32.totalorder %s2926_s1, %s2387_s16  ;;  %p2393_p10 = scmp.lt.u32.totalorder %s2391_s9, %s2387_s16 }
  0xaa   : > { %p2395_p3 = scmp.lt.u32.totalorder %s2387_s16, %s2926_s1 }
  0xab   : > { %p2389_p5 = pnand %p2388_p1, %p3263_p7  ;;  %p2394_p8 = por %p2393_p10, %p2392_p11 }
  0xad   : > { %p2390_p6 = pneg %p2389_p5  ;;  %p2396_p12 = por %p2395_p3, %p2394_p8 }
  0xaf   : > { %p2397_p2 = pnand %p2396_p12, %p2390_p6 }
  0xb1   : > { %2400 = shalt.err (!%p2397_p2)
}
  0xb2   : > { %s2401_s2 = scalar_lea.vmem %s2914_s21, 2048  ;;  %s2603_s25 = smov [#allocation7]  }
  0xb3   : > { %p2402_p4 = scmp.ne.s32.totalorder %s2914_s21, %s2401_s2  ;;  %s2405_s13 = sshll.u32 %s2603_s25, 4  ;;  %s2406_s13 = int_to_ptr.vmem [resolvable:$false] %s2405_s13 }
  0xb4   : > { %s2407_s0 = scalar_lea.vmem %s2406_s13, 4096  ;;  %p2408_p0 = scmp.lt.s32.totalorder %s2914_s21, %s2406_s13 }
  0xb5   : > { %p2403_p9 = pnand %p2402_p4, %p3263_p7  ;;  %p2409_p1 = scmp.lt.s32.totalorder %s2407_s0, %s2401_s2 }
  0xb7   : > { %p2404_p13 = pneg %p2403_p9  ;;  %p2410_p5 = por %p2409_p1, %p2408_p0 }
  0xb9   : > { %p2411_p11 = pnand %p2410_p5, %p2404_p13 }
  0xbb   : > { %2414 = shalt.err (!%p2411_p11)
}
  0xbc   : > { %s2604_s12 = smov 64   ;;  %s2605_s16 = smov 4  }
  0xbd   : > { %2123 = dma.hbm_to_vmem [thread:$0]  (%p3263_p7), %s2926_s1, 2048, %s2914_s21, %s2928_s26, %s2604_s12, %s2604_s12, %s2605_s16  }
  0xbe   : > { %s2957_s5 = scalar_lea.sflag [#allocation11], %s406_s10  ;;  %s2415_s8 = scalar_lea.hbm %s2919_s23, 1024 }
  0xbf   : > { %p2416_p6 = scmp.ne.s32.totalorder %s2919_s23, %s2415_s8  ;;  %p3264_p10 = scmp.ne.s32.totalorder %s3250_s20, 0 }
  0xc0   : > { %s2419_s15 = scalar_lea.hbm %s3203_s4, 4096  ;;  %p2420_p12 = scmp.lt.u32.totalorder %s2919_s23, %s3203_s4 }
  0xc1   : > { %p2417_p8 = pnand %p2416_p6, %p3264_p10  ;;  %p2421_p2 = scmp.lt.u32.totalorder %s2419_s15, %s2415_s8 }
  0xc2   : > { %p2423_p9 = scmp.lt.u32.totalorder %s2415_s8, %s2919_s23 }
  0xc3   : > { %p2418_p3 = pneg %p2417_p8  ;;  %p2422_p4 = por %p2421_p2, %p2420_p12 }
  0xc5   : > { %p2424_p7 = por %p2423_p9, %p2422_p4 }
  0xc7   : > { %p2425_p13 = pnand %p2424_p7, %p2418_p3 }
  0xc9   : > { %2428 = shalt.err (!%p2425_p13)
}
  0xca   : > { %s2429_s27 = scalar_lea.vmem %s2921_s17, 1024  ;;  %s2606_s21 = smov [#allocation10]  }
  0xcb   : > { %p2430_p0 = scmp.ne.s32.totalorder %s2921_s17, %s2429_s27  ;;  %s2433_s10 = sshll.u32 %s2606_s21, 4  ;;  %s2434_s10 = int_to_ptr.vmem [resolvable:$false] %s2433_s10 }
  0xcc   : > { %s2435_s1 = scalar_lea.vmem %s2434_s10, 2048  ;;  %p2436_p11 = scmp.lt.s32.totalorder %s2921_s17, %s2434_s10 }
  0xcd   : > { %p2431_p1 = pnand %p2430_p0, %p3264_p10  ;;  %p2437_p6 = scmp.lt.s32.totalorder %s2435_s1, %s2429_s27 }
  0xcf   : > { %p2432_p5 = pneg %p2431_p1  ;;  %p2438_p8 = por %p2437_p6, %p2436_p11 }
  0xd1   : > { %p2439_p12 = pnand %p2438_p8, %p2432_p5 }
  0xd3   : > { %2442 = shalt.err (!%p2439_p12)
}
  0xd4   : > { %2124 = dma.hbm_to_vmem [thread:$0]  (%p3264_p10), %s2919_s23, 1024, %s2921_s17, %s2957_s5, %s2604_s12, %s2604_s12, %s2605_s16  }
  0xd5 PF: > { %p3265_p3 = scmp.ne.s32.totalorder %s3258_s11, 0 }
  0xd6   : > { %s3266_s26 = sld [smem:[#allocation25_spill]] (!%p3265_p3)  ;;  %s3268_s0 = sld [smem:[#allocation31_spill]] (!%p3265_p3) }
  0xd7   : > { %438 = sbr.rel (%p3265_p3) target bundleno = 1163 (0x48b), region = 67  ;;  %s3267_s13 = sld [smem:[#allocation24_spill]] (!%p3265_p3) }
  0xdc   : > { %s441_s8 = sand.u32 (!%p3265_p3), 1, %s3266_s26   ;;  %p3269_p2 = scmp.ne.s32.totalorder (!%p3265_p3), %s3268_s0, 0 }
  0xdd   : > { %s447_s9 = sand.u32 (!%p3265_p3), 1, %s3267_s13   ;;  %s1777_s14 = sshll.u32 (!%p3265_p3), %s441_s8, 6 }
  0xde   : > { %s1778_s15 = sshll.u32 %s447_s9, 7  ;;  %s2988_s2 = scalar_lea.vmem [#allocation6], %s1777_s14 }
  0xdf   : > { %s448_s20 = scalar_lea.sflag [#allocation8], %s447_s9  ;;  %s2990_s25 = scalar_lea.vmem [#allocation7], %s1778_s15 }
  0xe0   : > { %2526 = dma.done.wait (%p3269_p2), %s448_s20, 2048  }
  0xe1   : > { %2528 = vsyncadd (%p3269_p2), %s448_s20, 4294965248  ;;  %s3270_s11 = sld [smem:[#allocation35_spill]]  ;;  %s456_s17 = sand.u32 1, %s2734_s30  }
  0xe2   : > { %s458_s23 = sand.u32 1, %s2551_s18   ;;  %s457_s16 = scalar_lea.sflag [#allocation11], %s456_s17 }
  0xe3   : > { %s1779_s12 = sshll.u32 %s458_s23, 6 }
  0xe4   : > { %s3000_s5 = scalar_lea.vmem [#allocation10], %s1779_s12 }
  0xe7   : > { %p3271_p10 = scmp.ne.s32.totalorder %s3270_s11, 0 }
  0xe9   : > { %2530 = dma.done.wait (%p3271_p10), %s457_s16, 1024  }
  0xea   : > { %2532 = vsyncadd (%p3271_p10), %s457_s16, 4294966272  ;;  %p3272_p4 = scmp.eq.s32.totalorder %s2734_s30, 0 }
  0xec   : > { %2534 = dma.done.wait (%p3272_p4), [#allocation11], 1024   ;;  %p3273_p9 = pmov %p3272_p4 }
  0xed   : > { %p3274_p7 = pmov %p3272_p4 }
  0xee   : > { %2536 = vsyncadd (%p3273_p9), [#allocation11], 4294966272 }
  0xef   : > { %2538 = dma.done.wait (%p3274_p7), [#allocation14], 1024   ;;  %p3275_p13 = pmov %p3272_p4 }
  0xf0   : > { %s3276_s27 = sld [smem:[#allocation27_spill]]  ;;  %s3277_s13 = sld [smem:[#allocation39_spill]] }
  0xf1   : > { %2540 = vsyncadd (%p3275_p13), [#allocation14], 4294966272  ;;  %s3020_s8 = scalar_lea.vmem [#allocation15], %s1779_s12  ;;  %s3278_s9 = sld [smem:[#allocation26_spill]] }
  0xf6   : > { %s1783_s21 = sshll.u32 %s3276_s27, 4 }
  0xf7   : > { %p534_p0 = scmp.lt.s32.totalorder %s1783_s21, 63  ;;  %p1785_p1 = scmp.ne.s32.totalorder %s3278_s9, 0 }
  0xf8   : > { %v2607_v8 = vmov (!%p1785_p1), 0.0  }
  0xf9   : > { %s3317_s21 = smov (!%p534_p0, %s1783_s21), 63  ;;  %544 = sbr.rel (%p1785_p1) target bundleno = 258 (0x102), region = 91 }
  0xfa   : > { %s1784_s10 = sshll.u32 %s3317_s21, 3  ;;  %545 = vst [vmem:[#allocation2] sm:$0xff] (!%p1785_p1), %v2607_v8  ;;  %546 = vst [vmem:[#allocation2 + $0x8] sm:$0xff] (!%p1785_p1), %v2607_v8 }
  0xfb   : > { %s3018_s0 = scalar_lea.vmem %s3277_s13, %s1784_s10  ;;  %547 = vst [vmem:[#allocation2 + $0x10] sm:$0xff] (!%p1785_p1), %v2607_v8  ;;  %548 = vst [vmem:[#allocation2 + $0x18] sm:$0xff] (!%p1785_p1), %v2607_v8 }
  0xfc   : > { %549 = vst [vmem:[#allocation2 + $0x20] sm:$0xff] (!%p1785_p1), %v2607_v8  ;;  %550 = vst [vmem:[#allocation2 + $0x28] sm:$0xff] (!%p1785_p1), %v2607_v8 }
  0xfd   : > { %551 = vst [vmem:[#allocation2 + $0x30] sm:$0xff] (!%p1785_p1), %v2607_v8  ;;  %552 = vst [vmem:[#allocation2 + $0x38] sm:$0xff] (!%p1785_p1), %v2607_v8 }
  0xfe   : > { %553 = vst [vmem:[#allocation2 + $0x40] sm:$0xff] (!%p1785_p1), %v2607_v8  ;;  %554 = vst [vmem:[#allocation2 + $0x48] sm:$0xff] (!%p1785_p1), %v2607_v8 }
  0xff   : > { %555 = vst [vmem:[#allocation2 + $0x50] sm:$0xff] (!%p1785_p1), %v2607_v8  ;;  %556 = vst [vmem:[#allocation2 + $0x58] sm:$0xff] (!%p1785_p1), %v2607_v8 }
 0x100   : > { %557 = vst [vmem:[#allocation2 + $0x60] sm:$0xff] %v2607_v8  ;;  %558 = vst [vmem:[#allocation2 + $0x68] sm:$0xff] %v2607_v8 }
 0x101   : > { %559 = vst [vmem:[#allocation2 + $0x70] sm:$0xff] %v2607_v8  ;;  %560 = vst [vmem:[#allocation2 + $0x78] sm:$0xff] %v2607_v8 }
 0x102 PF: > { %s3279_s30 = sld [smem:[#allocation27_spill]]  ;;  %s3280_s15 = sld [smem:[#allocation26_spill]] }
 0x108   : > { %s561_s14 = sld [smem:[#allocation5 + %s3279_s30]] }
 0x10e   : > { %p1786_p5 = scmp.ge.s32.totalorder %s3280_s15, %s561_s14 }
 0x10f   : > { %v2265_v9 = vld [vmem:[#allocation12] sm:$0xff] (!%p1786_p5)   ;;  %v2266_v10 = vld [vmem:[#allocation12 + $0x8] sm:$0xff] (!%p1786_p5)   ;;  %v2267_v11 = vld [vmem:[#allocation12 + $0x10] sm:$0xff] (!%p1786_p5)  }
 0x110   : > { %565 = sbr.rel (%p1786_p5) target bundleno = 861 (0x35d), region = 95  ;;  %2021 = vmatprep.subr.bf16.mxu0 (!%p1786_p5), %v2265_v9  ;;  %v2268_v12 = vld [vmem:[#allocation12 + $0x18] sm:$0xff] (!%p1786_p5)   ;;  %v2273_v13 = vld [vmem:[%s2990_s25] sm:$0xff] (!%p1786_p5)   ;;  %v2270_v15 = vld [vmem:[#allocation12 + $0x28] sm:$0xff] (!%p1786_p5)  }
 0x111   : > { %2022 = vmatpush3.bf16.msra.mxu0 (!%p1786_p5), %v2265_v9  ;;  %2037 = vmatprep.mubr.bf16.mxu0 (!%p1786_p5), %v2273_v13  ;;  %v2269_v14 = vld [vmem:[#allocation12 + $0x20] sm:$0xff] (!%p1786_p5)   ;;  %v2271_v16 = vld [vmem:[#allocation12 + $0x30] sm:$0xff] (!%p1786_p5)   ;;  %v2272_v17 = vld [vmem:[#allocation12 + $0x38] sm:$0xff] (!%p1786_p5)  }
 0x112   : > { %2023 = vmatprep.subr.bf16.mxu0 (!%p1786_p5), %v2266_v10  ;;  %v2274_v18 = vld [vmem:[%s2990_s25 + $0x8] sm:$0xff] (!%p1786_p5)   ;;  %v2275_v19 = vld [vmem:[%s2990_s25 + $0x10] sm:$0xff] (!%p1786_p5)   ;;  %v2276_v20 = vld [vmem:[%s2990_s25 + $0x18] sm:$0xff] (!%p1786_p5)  }
 0x113   : > { %v2277_v21 = vld [vmem:[%s2990_s25 + $0x20] sm:$0xff] (!%p1786_p5)   ;;  %v2278_v22 = vld [vmem:[%s2990_s25 + $0x28] sm:$0xff] (!%p1786_p5)   ;;  %v2279_v23 = vld [vmem:[%s2990_s25 + $0x30] sm:$0xff] (!%p1786_p5)  }
 0x114   : > { %v2280_v24 = vld [vmem:[%s2990_s25 + $0x38] sm:$0xff] (!%p1786_p5)   ;;  %v2281_v25 = vld [vmem:[%s2990_s25 + $0x40] sm:$0xff] (!%p1786_p5)   ;;  %v2282_v26 = vld [vmem:[%s2990_s25 + $0x48] sm:$0xff] (!%p1786_p5)  }
 0x115   : > { %2024 = vmatpush3.bf16.msra.mxu0 (!%p1786_p5), %v2266_v10  ;;  %v2283_v27 = vld [vmem:[%s2990_s25 + $0x50] sm:$0xff] (!%p1786_p5)   ;;  %v2284_v28 = vld [vmem:[%s2990_s25 + $0x58] sm:$0xff] (!%p1786_p5)   ;;  %v2285_v29 = vld [vmem:[%s2990_s25 + $0x60] sm:$0xff] (!%p1786_p5)  }
 0x116   : > { %2025 = vmatprep.subr.bf16.mxu0 (!%p1786_p5), %v2267_v11  ;;  %v2286_v30 = vld [vmem:[%s2990_s25 + $0x68] sm:$0xff] (!%p1786_p5)   ;;  %v2287_v31 = vld [vmem:[%s2990_s25 + $0x70] sm:$0xff] (!%p1786_p5)   ;;  %v2288_v32 = vld [vmem:[%s2990_s25 + $0x78] sm:$0xff] (!%p1786_p5)  }
 0x117   : > { %v3042_v33 = vld [vmem:[%s2988_s2 + $0x8] sm:$0xff] }
 0x118   : > { %v944_v34 = vunpack.c.l.s8.bf16 %v3042_v33 }
 0x119   : > { %2026 = vmatpush3.bf16.msra.mxu0 %v2267_v11 }
 0x11a   : > { %2027 = vmatprep.subr.bf16.mxu0 %v2268_v12  ;;  %1007 = vmatprep.mubr.bf16.mxu1 %v944_v34  ;;  %v942_v34 = vld [vmem:[%s2988_s2 + $0x38] sm:$0xff] }
 0x11d   : > { %2028 = vmatpush3.bf16.msra.mxu0 %v2268_v12 }
 0x11e   : > { %2029 = vmatprep.subr.bf16.mxu0 %v2269_v14 }
 0x121   : > { %2030 = vmatpush3.bf16.msra.mxu0 %v2269_v14 }
 0x122   : > { %2031 = vmatprep.subr.bf16.mxu0 %v2270_v15 }
 0x125   : > { %2032 = vmatpush3.bf16.msra.mxu0 %v2270_v15 }
 0x126   : > { %2033 = vmatprep.subr.bf16.mxu0 %v2271_v16 }
 0x129   : > { %2034 = vmatpush3.bf16.msra.mxu0 %v2271_v16 }
 0x12a   : > { %2035 = vmatprep.subr.bf16.mxu0 %v2272_v17 }
 0x12d   : > { %2036 = vmatpush3.bf16.msra.mxu0 %v2272_v17 }
 0x130   : > { %2038 = vmatmul.mubr.bf16.vlgmr.msra.gmra.mrb[0].mxu0 %v2274_v18 }
 0x131   : > { %2041 = vmatprep.mubr.bf16.mxu0 %v2275_v19  ;;  %v935_v19 = vld [vmem:[%s2988_s2] sm:$0xff] }
 0x138   : > { %2042 = vmatmul.mubr.bf16.gmra.mrb[4].mxu0 %v2276_v20  ;;  %v943_v20 = vunpack.c.l.s8.bf16 %v935_v19 }
 0x139   : > { %2045 = vmatprep.mubr.bf16.mxu0 %v2277_v21  ;;  %v946_v21 = vunpack.c.h.s8.bf16 %v3042_v33 }
 0x140   : > { %2046 = vmatmul.mubr.bf16.gmra.mrb[8].mxu0 %v2278_v22  ;;  %v938_v22 = vld [vmem:[%s2988_s2 + $0x18] sm:$0xff] }
 0x141   : > { %2049 = vmatprep.mubr.bf16.mxu0 %v2279_v23  ;;  %v945_v23 = vunpack.c.h.s8.bf16 %v935_v19 }
 0x148   : > { %2050 = vmatmul.mubr.bf16.gmra.mrb[12].mxu0 %v2280_v24  ;;  %v948_v24 = vunpack.c.l.s8.bf16 %v938_v22 }
 0x149   : > { %2053 = vmatprep.mubr.bf16.mxu0 %v2281_v25  ;;  %v937_v25 = vld [vmem:[%s2988_s2 + $0x10] sm:$0xff] }
 0x150   : > { %2054 = vmatmul.mubr.bf16.gmra.mrb[16].mxu0 %v2282_v26  ;;  %v947_v26 = vunpack.c.l.s8.bf16 %v937_v25 }
 0x151   : > { %2057 = vmatprep.mubr.bf16.mxu0 %v2283_v27  ;;  %v950_v27 = vunpack.c.h.s8.bf16 %v938_v22  ;;  %v968_v22 = vld [vmem:[#allocation2 + $0x48] sm:$0xff] }
 0x158   : > { %2058 = vmatmul.mubr.bf16.gmra.mrb[20].mxu0 %v2284_v28  ;;  %v940_v28 = vld [vmem:[%s2988_s2 + $0x28] sm:$0xff] }
 0x159   : > { %2061 = vmatprep.mubr.bf16.mxu0 %v2285_v29  ;;  %v949_v29 = vunpack.c.h.s8.bf16 %v937_v25  ;;  %v954_v33 = vunpack.c.h.s8.bf16 %v940_v28 }
 0x160   : > { %2062 = vmatmul.mubr.bf16.gmra.mrb[24].mxu0 %v2286_v30  ;;  %v952_v30 = vunpack.c.l.s8.bf16 %v940_v28  ;;  %v969_v28 = vld [vmem:[#allocation2 + $0x50] sm:$0xff] }
 0x161   : > { %2065 = vmatprep.mubr.bf16.mxu0 %v2287_v31  ;;  %v939_v31 = vld [vmem:[%s2988_s2 + $0x20] sm:$0xff] }
 0x168   : > { %2066 = vmatmul.mubr.bf16.gmra.mrb[28].mxu0 %v2288_v32  ;;  %v951_v32 = vunpack.c.l.s8.bf16 %v939_v31 }
 0x203   : > { %v2039_v35 = vpop.f32.mrb[0].mxu0 }
 0x204   : > { %v792_v36 = vpop.f32.mrb[1].mxu0 }
 0x205   : > { %v2040_v37 = vpop.f32.mrb[2].mxu0 }
 0x206   : > { %v920_v38 = vpack.c.bf16 %v2040_v37, %v2039_v35  ;;  %v795_v39 = vpop.f32.mrb[3].mxu0  ;;  %v953_v35 = vunpack.c.h.s8.bf16 %v939_v31  ;;  %v941_v37 = vld [vmem:[%s2988_s2 + $0x30] sm:$0xff] }
 0x207   : > { %v919_v40 = vpack.c.bf16 %v795_v39, %v792_v36  ;;  %v956_v36 = vunpack.c.l.s8.bf16 %v942_v34  ;;  %v958_v39 = vunpack.c.h.s8.bf16 %v942_v34 }
 0x20b   : > { %v2043_v41 = vpop.f32.mrb[4].mxu0 }
 0x20c   : > { %v808_v42 = vpop.f32.mrb[5].mxu0 }
 0x20d   : > { %v2044_v43 = vpop.f32.mrb[6].mxu0 }
 0x20e   : > { %v922_v44 = vpack.c.bf16 %v2044_v43, %v2043_v41  ;;  %v811_v45 = vpop.f32.mrb[7].mxu0 }
 0x20f   : > { %v921_v46 = vpack.c.bf16 %v811_v45, %v808_v42  ;;  %v959_v42 = vld [vmem:[#allocation2] sm:$0xff] }
 0x213   : > { %v2047_v47 = vpop.f32.mrb[8].mxu0 }
 0x214   : > { %v824_v48 = vpop.f32.mrb[9].mxu0 }
 0x215   : > { %v2048_v49 = vpop.f32.mrb[10].mxu0 }
 0x216   : > { %v924_v50 = vpack.c.bf16 %v2048_v49, %v2047_v47  ;;  %v827_v51 = vpop.f32.mrb[11].mxu0 }
 0x217   : > { %v923_v52 = vpack.c.bf16 %v827_v51, %v824_v48 }
 0x21b   : > { %v2051_v53 = vpop.f32.mrb[12].mxu0 }
 0x21c   : > { %v840_v54 = vpop.f32.mrb[13].mxu0 }
 0x21d   : > { %v2052_v55 = vpop.f32.mrb[14].mxu0 }
 0x21e   : > { %v926_v56 = vpack.c.bf16 %v2052_v55, %v2051_v53  ;;  %v843_v57 = vpop.f32.mrb[15].mxu0 }
 0x21f   : > { %v925_v58 = vpack.c.bf16 %v843_v57, %v840_v54 }
 0x223   : > { %v2055_v59 = vpop.f32.mrb[16].mxu0 }
 0x224   : > { %v856_v60 = vpop.f32.mrb[17].mxu0 }
 0x225   : > { %v2056_v61 = vpop.f32.mrb[18].mxu0 }
 0x226   : > { %v928_v62 = vpack.c.bf16 %v2056_v61, %v2055_v59  ;;  %v859_v63 = vpop.f32.mrb[19].mxu0 }
 0x227   : > { %v927_v0 = vpack.c.bf16 %v859_v63, %v856_v60 }
 0x229   : > { %1941 = vmatprep.subr.bf16.mxu1 %v927_v0 }
 0x22a   : > { %1942 = vmatpush3.bf16.msra.mxu1 %v919_v40  ;;  %v957_v40 = vunpack.c.h.s8.bf16 %v941_v37 }
 0x22b   : > { %v2059_v1 = vpop.f32.mrb[20].mxu0  ;;  %1943 = vmatprep.subr.bf16.mxu1 %v928_v62  ;;  %v963_v62 = vld [vmem:[#allocation2 + $0x20] sm:$0xff] }
 0x22c   : > { %v872_v2 = vpop.f32.mrb[21].mxu0 }
 0x22d   : > { %v2060_v3 = vpop.f32.mrb[22].mxu0 }
 0x22e   : > { %v930_v4 = vpack.c.bf16 %v2060_v3, %v2059_v1  ;;  %v875_v5 = vpop.f32.mrb[23].mxu0  ;;  %1944 = vmatpush3.bf16.msra.mxu1 %v920_v38  ;;  %v955_v38 = vunpack.c.l.s8.bf16 %v941_v37 }
 0x22f   : > { %v929_v6 = vpack.c.bf16 %v875_v5, %v872_v2  ;;  %v964_v2 = vld [vmem:[#allocation2 + $0x28] sm:$0xff] }
 0x231   : > { %1945 = vmatprep.subr.bf16.mxu1 %v929_v6 }
 0x232   : > { %1946 = vmatpush3.bf16.msra.mxu1 %v921_v46  ;;  %v960_v46 = vld [vmem:[#allocation2 + $0x8] sm:$0xff] }
 0x233   : > { %v2063_v7 = vpop.f32.mrb[24].mxu0  ;;  %1947 = vmatprep.subr.bf16.mxu1 %v930_v4 }
 0x234   : > { %v888_v8 = vpop.f32.mrb[25].mxu0 }
 0x235   : > { %v2064_v9 = vpop.f32.mrb[26].mxu0 }
 0x236   : > { %v932_v10 = vpack.c.bf16 %v2064_v9, %v2063_v7  ;;  %v891_v11 = vpop.f32.mrb[27].mxu0  ;;  %1948 = vmatpush3.bf16.msra.mxu1 %v922_v44 }
 0x237   : > { %v931_v12 = vpack.c.bf16 %v891_v11, %v888_v8  ;;  %v965_v8 = vld [vmem:[#allocation2 + $0x30] sm:$0xff] }
 0x239   : > { %1949 = vmatprep.subr.bf16.mxu1 %v931_v12  ;;  %v966_v12 = vld [vmem:[#allocation2 + $0x38] sm:$0xff] }
 0x23a   : > { %1950 = vmatpush3.bf16.msra.mxu1 %v923_v52  ;;  %v961_v52 = vld [vmem:[#allocation2 + $0x10] sm:$0xff] }
 0x23b   : > { %v2067_v13 = vpop.f32.mrb[28].mxu0  ;;  %1951 = vmatprep.subr.bf16.mxu1 %v932_v10 }
 0x23c   : > { %v904_v14 = vpop.f32.mrb[29].mxu0 }
 0x23d   : > { %v2068_v15 = vpop.f32.mrb[30].mxu0 }
 0x23e   : > { %v934_v16 = vpack.c.bf16 %v2068_v15, %v2067_v13  ;;  %v907_v17 = vpop.f32.mrb[31].mxu0  ;;  %1952 = vmatpush3.bf16.msra.mxu1 %v924_v50 }
 0x23f   : > { %v933_v18 = vpack.c.bf16 %v907_v17, %v904_v14 }
 0x241   : > { %1953 = vmatprep.subr.bf16.mxu1 %v933_v18  ;;  %v967_v18 = vld [vmem:[#allocation2 + $0x40] sm:$0xff] }
 0x242   : > { %1954 = vmatpush3.bf16.msra.mxu1 %v925_v58 }
 0x243   : > { %1955 = vmatprep.subr.bf16.mxu1 %v934_v16 }
 0x246   : > { %1956 = vmatpush3.bf16.msra.mxu1 %v926_v56  ;;  %v962_v56 = vld [vmem:[#allocation2 + $0x18] sm:$0xff] }
 0x249   : > { %1008 = vmatmul.mubr.bf16.vlgmr.msra.gmra.mrb[0].mxu1 %v943_v20 }
 0x24a   : > { %1015 = vmatprep.mubr.bf16.mxu1 %v946_v21 }
 0x251   : > { %1016 = vmatmul.mubr.bf16.gmra.mrb[4].mxu1 %v945_v23 }
 0x252   : > { %1023 = vmatprep.mubr.bf16.mxu1 %v948_v24 }
 0x259   : > { %1024 = vmatmul.mubr.bf16.gmra.mrb[8].mxu1 %v947_v26 }
 0x25a   : > { %1031 = vmatprep.mubr.bf16.mxu1 %v950_v27 }
 0x261   : > { %1032 = vmatmul.mubr.bf16.gmra.mrb[12].mxu1 %v949_v29 }
 0x262   : > { %1039 = vmatprep.mubr.bf16.mxu1 %v952_v30 }
 0x269   : > { %1040 = vmatmul.mubr.bf16.gmra.mrb[16].mxu1 %v951_v32  ;;  %v970_v32 = vld [vmem:[#allocation2 + $0x58] sm:$0xff] }
 0x26a   : > { %1047 = vmatprep.mubr.bf16.mxu1 %v954_v33 }
 0x271   : > { %1048 = vmatmul.mubr.bf16.gmra.mrb[20].mxu1 %v953_v35 }
 0x272   : > { %1055 = vmatprep.mubr.bf16.mxu1 %v956_v36 }
 0x279   : > { %1056 = vmatmul.mubr.bf16.gmra.mrb[24].mxu1 %v955_v38  ;;  %v971_v38 = vld [vmem:[#allocation2 + $0x60] sm:$0xff] }
 0x27a   : > { %1063 = vmatprep.mubr.bf16.mxu1 %v958_v39 }
 0x281   : > { %1064 = vmatmul.mubr.bf16.gmra.mrb[28].mxu1 %v957_v40 }
 0x31c   : > { %v1957_v41 = vpop.f32.mrb[0].mxu1 }
 0x31d   : > { %v1958_v43 = vpop.f32.mrb[1].mxu1 }
 0x31e   : > { %v1959_v44 = vadd.f32 %v1958_v43, %v1957_v41  ;;  %v1960_v45 = vpop.f32.mrb[2].mxu1 }
 0x31f   : > { %v1961_v47 = vpop.f32.mrb[3].mxu1 }
 0x320   : > { %v1072_v48 = vadd.f32 %v1959_v44, %v959_v42  ;;  %v1962_v49 = vadd.f32 %v1961_v47, %v1960_v45  ;;  %v972_v42 = vld [vmem:[#allocation2 + $0x68] sm:$0xff] }
 0x322   : > { %1088 = vst [vmem:[#allocation2] sm:$0xff] %v1072_v48  ;;  %v1073_v50 = vadd.f32 %v1962_v49, %v960_v46  ;;  %v973_v48 = vld [vmem:[#allocation2 + $0x70] sm:$0xff] }
 0x324   : > { %1089 = vst [vmem:[#allocation2 + $0x8] sm:$0xff] %v1073_v50  ;;  %v1963_v51 = vpop.f32.mrb[4].mxu1 }
 0x325   : > { %v1964_v53 = vpop.f32.mrb[5].mxu1 }
 0x326   : > { %v1965_v54 = vadd.f32 %v1964_v53, %v1963_v51  ;;  %v1966_v55 = vpop.f32.mrb[6].mxu1 }
 0x327   : > { %v1967_v57 = vpop.f32.mrb[7].mxu1 }
 0x328   : > { %v1074_v58 = vadd.f32 %v1965_v54, %v961_v52  ;;  %v1968_v59 = vadd.f32 %v1967_v57, %v1966_v55  ;;  %v974_v52 = vld [vmem:[#allocation2 + $0x78] sm:$0xff] }
 0x32a   : > { %1090 = vst [vmem:[#allocation2 + $0x10] sm:$0xff] %v1074_v58  ;;  %v1075_v60 = vadd.f32 %v1968_v59, %v962_v56 }
 0x32c   : > { %1091 = vst [vmem:[#allocation2 + $0x18] sm:$0xff] %v1075_v60  ;;  %v1969_v61 = vpop.f32.mrb[8].mxu1 }
 0x32d   : > { %v1970_v63 = vpop.f32.mrb[9].mxu1 }
 0x32e   : > { %v1971_v0 = vadd.f32 %v1970_v63, %v1969_v61  ;;  %v1972_v1 = vpop.f32.mrb[10].mxu1 }
 0x32f   : > { %v1973_v3 = vpop.f32.mrb[11].mxu1 }
 0x330   : > { %v1076_v4 = vadd.f32 %v1971_v0, %v963_v62  ;;  %v1974_v5 = vadd.f32 %v1973_v3, %v1972_v1 }
 0x332   : > { %1092 = vst [vmem:[#allocation2 + $0x20] sm:$0xff] %v1076_v4  ;;  %v1077_v6 = vadd.f32 %v1974_v5, %v964_v2 }
 0x334   : > { %1093 = vst [vmem:[#allocation2 + $0x28] sm:$0xff] %v1077_v6  ;;  %v1975_v7 = vpop.f32.mrb[12].mxu1 }
 0x335   : > { %v1976_v9 = vpop.f32.mrb[13].mxu1 }
 0x336   : > { %v1977_v10 = vadd.f32 %v1976_v9, %v1975_v7  ;;  %v1978_v11 = vpop.f32.mrb[14].mxu1 }
 0x337   : > { %v1979_v13 = vpop.f32.mrb[15].mxu1 }
 0x338   : > { %v1078_v14 = vadd.f32 %v1977_v10, %v965_v8  ;;  %v1980_v15 = vadd.f32 %v1979_v13, %v1978_v11 }
 0x33a   : > { %1094 = vst [vmem:[#allocation2 + $0x30] sm:$0xff] %v1078_v14  ;;  %v1079_v16 = vadd.f32 %v1980_v15, %v966_v12 }
 0x33c   : > { %1095 = vst [vmem:[#allocation2 + $0x38] sm:$0xff] %v1079_v16  ;;  %v1981_v17 = vpop.f32.mrb[16].mxu1 }
 0x33d   : > { %v1982_v19 = vpop.f32.mrb[17].mxu1 }
 0x33e   : > { %v1983_v20 = vadd.f32 %v1982_v19, %v1981_v17  ;;  %v1984_v21 = vpop.f32.mrb[18].mxu1 }
 0x33f   : > { %v1985_v23 = vpop.f32.mrb[19].mxu1 }
 0x340   : > { %v1080_v24 = vadd.f32 %v1983_v20, %v967_v18  ;;  %v1986_v25 = vadd.f32 %v1985_v23, %v1984_v21 }
 0x342   : > { %1096 = vst [vmem:[#allocation2 + $0x40] sm:$0xff] %v1080_v24  ;;  %v1081_v26 = vadd.f32 %v1986_v25, %v968_v22 }
 0x344   : > { %1097 = vst [vmem:[#allocation2 + $0x48] sm:$0xff] %v1081_v26  ;;  %v1987_v27 = vpop.f32.mrb[20].mxu1 }
 0x345   : > { %v1988_v29 = vpop.f32.mrb[21].mxu1 }
 0x346   : > { %v1989_v30 = vadd.f32 %v1988_v29, %v1987_v27  ;;  %v1990_v31 = vpop.f32.mrb[22].mxu1 }
 0x347   : > { %v1991_v33 = vpop.f32.mrb[23].mxu1 }
 0x348   : > { %v1082_v34 = vadd.f32 %v1989_v30, %v969_v28  ;;  %v1992_v35 = vadd.f32 %v1991_v33, %v1990_v31 }
 0x34a   : > { %1098 = vst [vmem:[#allocation2 + $0x50] sm:$0xff] %v1082_v34  ;;  %v1083_v36 = vadd.f32 %v1992_v35, %v970_v32 }
 0x34c   : > { %1099 = vst [vmem:[#allocation2 + $0x58] sm:$0xff] %v1083_v36  ;;  %v1993_v37 = vpop.f32.mrb[24].mxu1 }
 0x34d   : > { %v1994_v39 = vpop.f32.mrb[25].mxu1 }
 0x34e   : > { %v1995_v40 = vadd.f32 %v1994_v39, %v1993_v37  ;;  %v1996_v41 = vpop.f32.mrb[26].mxu1 }
 0x34f   : > { %v1997_v43 = vpop.f32.mrb[27].mxu1 }
 0x350   : > { %v1084_v44 = vadd.f32 %v1995_v40, %v971_v38  ;;  %v1998_v45 = vadd.f32 %v1997_v43, %v1996_v41 }
 0x352   : > { %1100 = vst [vmem:[#allocation2 + $0x60] sm:$0xff] %v1084_v44  ;;  %v1085_v46 = vadd.f32 %v1998_v45, %v972_v42 }
 0x354   : > { %1101 = vst [vmem:[#allocation2 + $0x68] sm:$0xff] %v1085_v46  ;;  %v1999_v47 = vpop.f32.mrb[28].mxu1 }
 0x355   : > { %v2000_v49 = vpop.f32.mrb[29].mxu1 }
 0x356   : > { %v2001_v50 = vadd.f32 %v2000_v49, %v1999_v47  ;;  %v2002_v51 = vpop.f32.mrb[30].mxu1 }
 0x357   : > { %v2003_v53 = vpop.f32.mrb[31].mxu1 }
 0x358   : > { %v1086_v54 = vadd.f32 %v2001_v50, %v973_v48  ;;  %v2004_v55 = vadd.f32 %v2003_v53, %v2002_v51 }
 0x35a   : > { %1102 = vst [vmem:[#allocation2 + $0x70] sm:$0xff] %v1086_v54  ;;  %v1087_v56 = vadd.f32 %v2004_v55, %v974_v52 }
 0x35c   : > { %1103 = vst [vmem:[#allocation2 + $0x78] sm:$0xff] %v1087_v56 }
 0x35d PF: > { %s3281_s2 = sld [smem:[#allocation26_spill]] }
 0x363   : > { %p1811_p11 = scmp.ne.s32.totalorder %s3281_s2, 1 }
 0x364   : > { %v2291_v57 = vld [vmem:[#allocation13] sm:$0xff] (!%p1811_p11)   ;;  %v2292_v58 = vld [vmem:[#allocation13 + $0x8] sm:$0xff] (!%p1811_p11)   ;;  %v2608_v59 = vmov (!%p1811_p11), 0   ;;  %v2293_v60 = vld [vmem:[#allocation13 + $0x10] sm:$0xff] (!%p1811_p11)   ;;  %s3282_s11 = sld [smem:[#allocation40_spill]] (!%p1811_p11) }
 0x365   : > { %1107 = sbr.rel (%p1811_p11) target bundleno = 1135 (0x46f), region = 99  ;;  %2290 = vset.pattern.permute.xlu1 (!%p1811_p11), %v2608_v59  ;;  %2289 = vset.pattern.permute.xlu0 (!%p1811_p11), %v2608_v59  ;;  %v2294_v61 = vld [vmem:[#allocation13 + $0x18] sm:$0xff] (!%p1811_p11)   ;;  %v2299_v62 = vld [vmem:[%s3000_s5] sm:$0xff] (!%p1811_p11)   ;;  %v2296_v1 = vld [vmem:[#allocation13 + $0x28] sm:$0xff] (!%p1811_p11)  }
 0x366   : > { %2069 = vmatprep.subr.bf16.mxu0 (!%p1811_p11), %v2291_v57  ;;  %2101 = vmatprep.subr.bf16.mxu1 (!%p1811_p11), %v2291_v57  ;;  %v2300_v63 = vld [vmem:[%s3000_s5 + $0x20] sm:$0xff] (!%p1811_p11)   ;;  %v1358_v2 = vld [vmem:[%s3018_s0 + $0x10] sm:$0xff] (!%p1811_p11)  ;;  %v1356_v3 = vld [vmem:[%s3018_s0] sm:$0xff] (!%p1811_p11) }
 0x367   : > { %2070 = vmatpush3.bf16.msra.mxu0 (!%p1811_p11), %v2291_v57  ;;  %2109 = vmatpush3.bf16.msra.mxu1 (!%p1811_p11), %v2291_v57  ;;  %v2295_v0 = vld [vmem:[#allocation13 + $0x20] sm:$0xff] (!%p1811_p11)   ;;  %v1359_v4 = vld [vmem:[%s3018_s0 + $0x18] sm:$0xff] (!%p1811_p11)  ;;  %v1360_v8 = vld [vmem:[%s3018_s0 + $0x20] sm:$0xff] (!%p1811_p11) }
 0x368   : > { %2071 = vmatprep.subr.bf16.mxu0 (!%p1811_p11), %v2292_v58  ;;  %2102 = vmatprep.subr.bf16.mxu1 (!%p1811_p11), %v2292_v58  ;;  %v1357_v5 = vld [vmem:[%s3018_s0 + $0x8] sm:$0xff] (!%p1811_p11)  ;;  %v2297_v6 = vld [vmem:[#allocation13 + $0x30] sm:$0xff] (!%p1811_p11)   ;;  %v2298_v9 = vld [vmem:[#allocation13 + $0x38] sm:$0xff] (!%p1811_p11)  }
 0x369   : > { %2085 = vmatprep.mubr.bf16.mxu0 (!%p1811_p11), %v2299_v62  ;;  %2093 = vmatprep.mubr.bf16.mxu1 (!%p1811_p11), %v2300_v63  ;;  %v1361_v7 = vld [vmem:[%s3018_s0 + $0x28] sm:$0xff] (!%p1811_p11)  ;;  %v1363_v10 = vld [vmem:[%s3018_s0 + $0x38] sm:$0xff] (!%p1811_p11)  ;;  %v1362_v11 = vld [vmem:[%s3018_s0 + $0x30] sm:$0xff] (!%p1811_p11) }
 0x36a   : > { %1384 = vperm.xlu1 (!%p1811_p11), %2290, %v1358_v2   ;;  %1374 = vperm.xlu0 (!%p1811_p11), %2289, %v1356_v3   ;;  %v2301_v12 = vld [vmem:[%s3000_s5 + $0x8] sm:$0xff] (!%p1811_p11)   ;;  %v1365_v14 = vld [vmem:[%s3018_s0 + $0x48] sm:$0xff] (!%p1811_p11)  ;;  %v1364_v15 = vld [vmem:[%s3018_s0 + $0x40] sm:$0xff] (!%p1811_p11) }
 0x36b   : > { %2072 = vmatpush3.bf16.msra.mxu0 (!%p1811_p11), %v2292_v58  ;;  %2110 = vmatpush3.bf16.msra.mxu1 (!%p1811_p11), %v2292_v58  ;;  %v2302_v13 = vld [vmem:[%s3000_s5 + $0x28] sm:$0xff] (!%p1811_p11)   ;;  %v2303_v16 = vld [vmem:[%s3000_s5 + $0x10] sm:$0xff] (!%p1811_p11)   ;;  %v2305_v20 = vld [vmem:[%s3000_s5 + $0x18] sm:$0xff] (!%p1811_p11)  }
 0x36c   : > { %2073 = vmatprep.subr.bf16.mxu0 %v2293_v60  ;;  %2103 = vmatprep.subr.bf16.mxu1 %v2293_v60  ;;  %v2304_v17 = vld [vmem:[%s3000_s5 + $0x30] sm:$0xff]   ;;  %v1366_v19 = vld [vmem:[%s3018_s0 + $0x50] sm:$0xff]  ;;  %v2306_v21 = vld [vmem:[%s3000_s5 + $0x38] sm:$0xff]  }
 0x36d   : > { %v1367_v18 = vld [vmem:[%s3018_s0 + $0x58] sm:$0xff]  ;;  %v1369_v22 = vld [vmem:[%s3018_s0 + $0x68] sm:$0xff]  ;;  %v1368_v23 = vld [vmem:[%s3018_s0 + $0x60] sm:$0xff] }
 0x36e   : > { %1389 = vperm.xlu1 %2290, %v1359_v4   ;;  %1379 = vperm.xlu0 %2289, %v1357_v5   ;;  %v1371_v24 = vld [vmem:[%s3018_s0 + $0x78] sm:$0xff]  ;;  %v1370_v25 = vld [vmem:[%s3018_s0 + $0x70] sm:$0xff]  ;;  %v1340_v41 = vld [vmem:[#allocation2] sm:$0xff] }
 0x36f   : > { %2074 = vmatpush3.bf16.msra.mxu0 %v2293_v60  ;;  %2111 = vmatpush3.bf16.msra.mxu1 %v2293_v60  ;;  %v1342_v40 = vld [vmem:[#allocation2 + $0x10] sm:$0xff]  ;;  %v1343_v42 = vld [vmem:[#allocation2 + $0x18] sm:$0xff]  ;;  %v1341_v43 = vld [vmem:[#allocation2 + $0x8] sm:$0xff] }
 0x370   : > { %2075 = vmatprep.subr.bf16.mxu0 %v2294_v61  ;;  %2104 = vmatprep.subr.bf16.mxu1 %v2294_v61  ;;  %v1345_v44 = vld [vmem:[#allocation2 + $0x28] sm:$0xff]  ;;  %v1344_v45 = vld [vmem:[#allocation2 + $0x20] sm:$0xff]  ;;  %v1347_v46 = vld [vmem:[#allocation2 + $0x38] sm:$0xff] }
 0x371   : > { %v1346_v47 = vld [vmem:[#allocation2 + $0x30] sm:$0xff]  ;;  %v1349_v48 = vld [vmem:[#allocation2 + $0x48] sm:$0xff]  ;;  %v3081_v50 = vld [vmem:[%s3282_s11] ss:$0 sm:$0xff] }
 0x372   : > { %1399 = vperm.xlu1 %2290, %v1361_v7   ;;  %1394 = vperm.xlu0 %2289, %v1360_v8   ;;  %v1350_v49 = vld [vmem:[#allocation2 + $0x50] sm:$0xff]  ;;  %v1348_v55 = vld [vmem:[#allocation2 + $0x40] sm:$0xff]  ;;  %v1351_v56 = vld [vmem:[#allocation2 + $0x58] sm:$0xff] }
 0x373   : > { %2076 = vmatpush3.bf16.msra.mxu0 %v2294_v61  ;;  %2112 = vmatpush3.bf16.msra.mxu1 %v2294_v61 }
 0x374   : > { %2077 = vmatprep.subr.bf16.mxu0 %v2295_v0  ;;  %2105 = vmatprep.subr.bf16.mxu1 %v2295_v0 }
 0x376   : > { %1409 = vperm.xlu1 %2290, %v1363_v10   ;;  %1404 = vperm.xlu0 %2289, %v1362_v11   ;;  %v1352_v10 = vld [vmem:[#allocation2 + $0x60] sm:$0xff] }
 0x377   : > { %2078 = vmatpush3.bf16.msra.mxu0 %v2295_v0  ;;  %2113 = vmatpush3.bf16.msra.mxu1 %v2295_v0 }
 0x378   : > { %2079 = vmatprep.subr.bf16.mxu0 %v2296_v1  ;;  %2106 = vmatprep.subr.bf16.mxu1 %v2296_v1 }
 0x37a   : > { %1419 = vperm.xlu1 %2290, %v1365_v14   ;;  %1414 = vperm.xlu0 %2289, %v1364_v15   ;;  %v1355_v15 = vld [vmem:[#allocation2 + $0x78] sm:$0xff] }
 0x37b   : > { %2080 = vmatpush3.bf16.msra.mxu0 %v2296_v1  ;;  %2114 = vmatpush3.bf16.msra.mxu1 %v2296_v1 }
 0x37c   : > { %2081 = vmatprep.subr.bf16.mxu0 %v2297_v6  ;;  %2107 = vmatprep.subr.bf16.mxu1 %v2297_v6 }
 0x37e   : > { %1429 = vperm.xlu1 %2290, %v1367_v18   ;;  %1424 = vperm.xlu0 %2289, %v1366_v19  }
 0x37f   : > { %2082 = vmatpush3.bf16.msra.mxu0 %v2297_v6  ;;  %2115 = vmatpush3.bf16.msra.mxu1 %v2297_v6 }
 0x380   : > { %2083 = vmatprep.subr.bf16.mxu0 %v2298_v9  ;;  %2108 = vmatprep.subr.bf16.mxu1 %v2298_v9 }
 0x382   : > { %1439 = vperm.xlu1 %2290, %v1369_v22   ;;  %1434 = vperm.xlu0 %2289, %v1368_v23  }
 0x383   : > { %2084 = vmatpush3.bf16.msra.mxu0 %v2298_v9  ;;  %2116 = vmatpush3.bf16.msra.mxu1 %v2298_v9  ;;  %v1353_v9 = vld [vmem:[#allocation2 + $0x68] sm:$0xff] }
 0x386   : > { %2086 = vmatmul.mubr.bf16.vlgmr.msra.gmra.mrb[0].mxu0 %v2301_v12  ;;  %2094 = vmatmul.mubr.bf16.vlgmr.msra.gmra.mrb[0].mxu1 %v2302_v13 }
 0x387   : > { %2089 = vmatprep.mubr.bf16.mxu0 %v2303_v16  ;;  %2097 = vmatprep.mubr.bf16.mxu1 %v2304_v17  ;;  %v1354_v16 = vld [vmem:[#allocation2 + $0x70] sm:$0xff] }
 0x388   : > { %1449 = vperm.xlu1 %2290, %v1371_v24   ;;  %1444 = vperm.xlu0 %2289, %v1370_v25  }
 0x38e   : > { %2090 = vmatmul.mubr.bf16.gmra.mrb[4].mxu0 %v2305_v20  ;;  %2098 = vmatmul.mubr.bf16.gmra.mrb[4].mxu1 %v2306_v21 }
 0x3e9   : > { %v1385_v26 = vpop.permute.xlu1 %1384  ;;  %v1375_v27 = vpop.permute.xlu0 %1374 }
 0x3ea   : > { %v1454_v51 = vmul.f32 %v1385_v26, %v1342_v40  ;;  %v1452_v52 = vmul.f32 %v1375_v27, %v1340_v41 }
 0x3ed   : > { %v1390_v28 = vpop.permute.xlu1 %1389  ;;  %v1380_v29 = vpop.permute.xlu0 %1379 }
 0x3ee   : > { %v1455_v53 = vmul.f32 %v1390_v28, %v1343_v42  ;;  %v1453_v54 = vmul.f32 %v1380_v29, %v1341_v43 }
 0x3f1   : > { %v1400_v30 = vpop.permute.xlu1 %1399  ;;  %v1395_v31 = vpop.permute.xlu0 %1394 }
 0x3f2   : > { %v3083_v59 = vmul.f32 %v1400_v30, %v1345_v44  ;;  %v3085_v60 = vmul.f32 %v1395_v31, %v1344_v45 }
 0x3f5   : > { %v1410_v32 = vpop.permute.xlu1 %1409  ;;  %v1405_v33 = vpop.permute.xlu0 %1404 }
 0x3f6   : > { %v3087_v61 = vmul.f32 %v1410_v32, %v1347_v46  ;;  %v1458_v62 = vmul.f32 %v1405_v33, %v1346_v47 }
 0x3f9   : > { %v1420_v34 = vpop.permute.xlu1 %1419  ;;  %v1415_v35 = vpop.permute.xlu0 %1414 }
 0x3fa   : > { %v1461_v1 = vmul.f32 %v1420_v34, %v1349_v48  ;;  %v1460_v7 = vmul.f32 %v1415_v35, %v1348_v55 }
 0x3fd   : > { %v1430_v36 = vpop.permute.xlu1 %1429  ;;  %v1425_v37 = vpop.permute.xlu0 %1424 }
 0x3fe   : > { %v1462_v2 = vmul.f32 %v1425_v37, %v1350_v49  ;;  %v1463_v8 = vmul.f32 %v1430_v36, %v1351_v56 }
 0x401   : > { %v1440_v38 = vpop.permute.xlu1 %1439  ;;  %v1435_v39 = vpop.permute.xlu0 %1434 }
 0x402   : > { %v1465_v27 = vmul.f32 %v1440_v38, %v1353_v9  ;;  %v1464_v28 = vmul.f32 %v1435_v39, %v1352_v10 }
 0x407   : > { %v1450_v57 = vpop.permute.xlu1 %1449  ;;  %v1445_v58 = vpop.permute.xlu0 %1444 }
 0x408   : > { %v1467_v31 = vmul.f32 %v1450_v57, %v1355_v15  ;;  %v1466_v32 = vmul.f32 %v1445_v58, %v1354_v16 }
 0x459   : > { %v2087_v63 = vpop.f32.mrb[0].mxu0  ;;  %v2095_v0 = vpop.f32.mrb[0].mxu1 }
 0x45a   : > { %v1286_v3 = vadd.f32 %v2087_v63, %v3081_v50  ;;  %v1318_v4 = vadd.f32 %v2095_v0, %v3081_v50  ;;  %v1277_v5 = vpop.f32.mrb[1].mxu0  ;;  %v1309_v6 = vpop.f32.mrb[1].mxu1 }
 0x45b   : > { %v1278_v11 = vadd.f32 %v3081_v50, %v1277_v5  ;;  %v1310_v12 = vadd.f32 %v3081_v50, %v1309_v6  ;;  %v2088_v13 = vpop.f32.mrb[2].mxu0  ;;  %v2096_v14 = vpop.f32.mrb[2].mxu1 }
 0x45c   : > { %v1470_v17 = vadd.f32 %v1454_v51, %v1286_v3  ;;  %v1478_v18 = vadd.f32 %v1462_v2, %v1318_v4  ;;  %v1289_v19 = vadd.f32 %v2088_v13, %v3081_v50  ;;  %v1321_v20 = vadd.f32 %v2096_v14, %v3081_v50  ;;  %v1280_v21 = vpop.f32.mrb[3].mxu0  ;;  %v1312_v22 = vpop.f32.mrb[3].mxu1 }
 0x45d   : > { %v1468_v23 = vadd.f32 %v1452_v52, %v1278_v11  ;;  %v1476_v24 = vadd.f32 %v1460_v7, %v1310_v12  ;;  %v1281_v25 = vadd.f32 %v3081_v50, %v1280_v21  ;;  %v1313_v26 = vadd.f32 %v3081_v50, %v1312_v22 }
 0x45e   : > { %v1471_v29 = vadd.f32 %v1455_v53, %v1289_v19  ;;  %v1479_v30 = vadd.f32 %v1463_v8, %v1321_v20  ;;  %v1486_v35 = vmax.f32 %v1470_v17, 0.0  ;;  %v1494_v36 = vmax.f32 %v1478_v18, 0.0 }
 0x45f   : > { %v1469_v33 = vadd.f32 %v1453_v54, %v1281_v25  ;;  %v1477_v34 = vadd.f32 %v1461_v1, %v1313_v26  ;;  %v1484_v41 = vmax.f32 %v1468_v23, 0.0  ;;  %v1492_v42 = vmax.f32 %v1476_v24, 0.0 }
 0x460   : > { %v1487_v37 = vmax.f32 %v1471_v29, 0.0  ;;  %v1495_v40 = vmax.f32 %v1479_v30, 0.0 }
 0x461   : > { %v1485_v43 = vmax.f32 %v1469_v33, 0.0  ;;  %v1493_v44 = vmax.f32 %v1477_v34, 0.0  ;;  %v2091_v45 = vpop.f32.mrb[4].mxu0  ;;  %v2099_v46 = vpop.f32.mrb[4].mxu1 }
 0x462   : > { %v1878_v38 = vpack.c.bf16 %v1487_v37, %v1486_v35  ;;  %v1898_v39 = vpack.c.bf16 %v1495_v40, %v1494_v36  ;;  %v1302_v47 = vadd.f32 %v2091_v45, %v3081_v50  ;;  %v1334_v48 = vadd.f32 %v2099_v46, %v3081_v50  ;;  %v1293_v49 = vpop.f32.mrb[5].mxu0  ;;  %v1325_v51 = vpop.f32.mrb[5].mxu1 }
 0x463   : > { %v1873_v52 = vpack.c.bf16 %v1485_v43, %v1484_v41  ;;  %v1893_v53 = vpack.c.bf16 %v1493_v44, %v1492_v42  ;;  %v1294_v54 = vadd.f32 %v3081_v50, %v1293_v49  ;;  %v1326_v55 = vadd.f32 %v3081_v50, %v1325_v51  ;;  %v2092_v56 = vpop.f32.mrb[6].mxu0  ;;  %v2100_v57 = vpop.f32.mrb[6].mxu1 }
 0x464   : > { %1910 = vst [vmem:[%s3020_s8 + $0x8] sm:$0xff] %v1878_v38   ;;  %1914 = vst [vmem:[%s3020_s8 + $0x28] sm:$0xff] %v1898_v39   ;;  %v1474_v58 = vadd.f32 %v1458_v62, %v1302_v47  ;;  %v1482_v63 = vadd.f32 %v1466_v32, %v1334_v48  ;;  %v1305_v0 = vadd.f32 %v2092_v56, %v3081_v50  ;;  %v1296_v2 = vpop.f32.mrb[7].mxu0  ;;  %v1328_v3 = vpop.f32.mrb[7].mxu1 }
 0x465   : > { %v1337_v1 = vadd.f32 %v2100_v57, %v3081_v50  ;;  %1874 = vst [vmem:[%s3020_s8] sm:$0xff] %v1873_v52   ;;  %1913 = vst [vmem:[%s3020_s8 + $0x20] sm:$0xff] %v1893_v53   ;;  %v1472_v4 = vadd.f32 %v3085_v60, %v1294_v54  ;;  %v1480_v5 = vadd.f32 %v1464_v28, %v1326_v55 }
 0x466   : > { %v1297_v6 = vadd.f32 %v3081_v50, %v1296_v2  ;;  %v1329_v7 = vadd.f32 %v3081_v50, %v1328_v3  ;;  %v1475_v8 = vadd.f32 %v3087_v61, %v1305_v0  ;;  %v1490_v11 = vmax.f32 %v1474_v58, 0.0 }
 0x467   : > { %v1483_v62 = vadd.f32 %v1467_v31, %v1337_v1  ;;  %v1498_v12 = vmax.f32 %v1482_v63, 0.0  ;;  %v1488_v60 = vmax.f32 %v1472_v4, 0.0  ;;  %v1496_v15 = vmax.f32 %v1480_v5, 0.0 }
 0x468   : > { %v1473_v9 = vadd.f32 %v3083_v59, %v1297_v6  ;;  %v1481_v10 = vadd.f32 %v1465_v27, %v1329_v7  ;;  %v1491_v13 = vmax.f32 %v1475_v8, 0.0 }
 0x469   : > { %v1499_v14 = vmax.f32 %v1483_v62, 0.0 }
 0x46a   : > { %v1489_v16 = vmax.f32 %v1473_v9, 0.0  ;;  %v1497_v17 = vmax.f32 %v1481_v10, 0.0  ;;  %v1888_v18 = vpack.c.bf16 %v1491_v13, %v1490_v11 }
 0x46b   : > { %v1908_v50 = vpack.c.bf16 %v1499_v14, %v1498_v12 }
 0x46c   : > { %v1883_v19 = vpack.c.bf16 %v1489_v16, %v1488_v60  ;;  %v1903_v61 = vpack.c.bf16 %v1497_v17, %v1496_v15  ;;  %1912 = vst [vmem:[%s3020_s8 + $0x18] sm:$0xff] %v1888_v18  }
 0x46d   : > { %1916 = vst [vmem:[%s3020_s8 + $0x38] sm:$0xff] %v1908_v50  }
 0x46e   : > { %1911 = vst [vmem:[%s3020_s8 + $0x10] sm:$0xff] %v1883_v19   ;;  %1915 = vst [vmem:[%s3020_s8 + $0x30] sm:$0xff] %v1903_v61  }
 0x46f PF: > { %s3283_s17 = sld [smem:[#allocation27_spill]]  ;;  %s3284_s12 = sld [smem:[#allocation36_spill]] }
 0x470   : > { %s3285_s21 = sld [smem:[#allocation41_spill]]  ;;  %s1594_s26 = sshll.u32 %s3020_s8, 4  ;;  %s3123_s26 = int_to_ptr.vmem [resolvable:$true] %s1594_s26 }
 0x471   : > { %s3127_s13 = scalar_lea.sflag [#allocation9], %s458_s23  ;;  %s2443_s0 = scalar_lea.vmem %s3123_s26, 1024 }
 0x472   : > { %p2444_p6 = scmp.ne.s32.totalorder %s3123_s26, %s2443_s0  ;;  %s2609_s9 = smov [#allocation15]  }
 0x473   : > { %s2447_s30 = sshll.u32 %s2609_s9, 4  ;;  %s2448_s30 = int_to_ptr.vmem [resolvable:$false] %s2447_s30 }
 0x474   : > { %s2449_s14 = scalar_lea.vmem %s2448_s30, 2048  ;;  %p2450_p2 = scmp.lt.s32.totalorder %s3123_s26, %s2448_s30 }
 0x475   : > { %s1869_s16 = sshll.u32 %s3283_s17, 10  ;;  %p3287_p8 = scmp.ne.s32.totalorder %s3284_s12, 0 }
 0x476   : > { %s3286_s10 = smov %s3285_s21  ;;  %s3120_s1 = scalar_lea.hbm %s3285_s21, %s1869_s16 }
 0x477   : > { %p2445_p12 = pnand %p2444_p6, %p3287_p8  ;;  %p2451_p10 = scmp.lt.s32.totalorder %s2449_s14, %s2443_s0 }
 0x479   : > { %p2446_p3 = pneg %p2445_p12  ;;  %p2452_p4 = por %p2451_p10, %p2450_p2 }
 0x47b   : > { %p2453_p9 = pnand %p2452_p4, %p2446_p3 }
 0x47d   : > { %2456 = shalt.err (!%p2453_p9)
}
 0x47e   : > { %s2457_s23 = scalar_lea.hbm %s3120_s1, 1024  ;;  %s2461_s2 = scalar_lea.hbm %s3286_s10, 4096 }
 0x47f   : > { %p2458_p7 = scmp.ne.s32.totalorder %s3120_s1, %s2457_s23  ;;  %p2462_p1 = scmp.lt.u32.totalorder %s3120_s1, %s3286_s10 }
 0x480   : > { %p2463_p5 = scmp.lt.u32.totalorder %s2461_s2, %s2457_s23  ;;  %p2465_p6 = scmp.lt.u32.totalorder %s2457_s23, %s3120_s1 }
 0x481   : > { %p2459_p13 = pnand %p2458_p7, %p3287_p8 }
 0x482   : > { %p2464_p11 = por %p2463_p5, %p2462_p1 }
 0x483   : > { %p2460_p0 = pneg %p2459_p13 }
 0x484   : > { %p2466_p12 = por %p2465_p6, %p2464_p11 }
 0x486   : > { %p2467_p3 = pnand %p2466_p12, %p2460_p0 }
 0x488   : > { %2470 = shalt.err (!%p2467_p3)
}
 0x489   : > { %s2610_s11 = smov 64   ;;  %s2611_s17 = smov 4  }
 0x48a   : > { %2131 = dma.vmem_to_hbm [thread:$0]  (%p3287_p8), %s3123_s26, 1024, %s3120_s1, %s3127_s13, %s2610_s11, %s2610_s11, %s2611_s17  }
 0x48b PF: > { %s3288_s16 = sld [smem:[#allocation23_spill]]  ;;  %s3289_s5 = sld [smem:[#allocation37_spill]] }
 0x48c   : > { %p2148_p2 = scmp.ge.s32.totalorder %s2595_s29, 2 }
 0x491   : > { %s1609_s27 = sand.u32 1, %s3288_s16   ;;  %p3290_p10 = scmp.ne.s32.totalorder %s3289_s5, 0 }
 0x492   : > { %s1610_s21 = scalar_lea.sflag [#allocation9], %s1609_s27 }
 0x493   : > { %p2141_p4 = pnand %p2148_p2, %p3290_p10 }
 0x495   : > { %2542 = dma.done.wait (!%p2141_p4), %s1610_s21, 1024  }
 0x496   : > { %2544 = vsyncadd (!%p2141_p4), %s1610_s21, 4294966272  ;;  %s39_s29 = sadd.s32 1, %s2595_s29   ;;  %s3292_s12 = sld [smem:[#allocation32_spill]] }
 0x497   : > { %p3156_p9 = scmp.ge.s32.totalorder %s39_s29, 10   ;;  %s3293_s20 = sld [smem:[#allocation24_spill]] }
 0x498   : > { %s3294_s26 = sld [smem:[#allocation34_spill]]  ;;  %s3295_s13 = sld [smem:[#allocation33_spill]] }
 0x499   : > { %s3296_s25 = sld [smem:[#allocation28_spill]]  ;;  %s3297_s27 = sld [smem:[#allocation29_spill]] }
 0x49a   : > { %s3298_s9 = sld [smem:[#allocation30_spill]]  ;;  %s3299_s1 = smov %s2551_s18 }
 0x49b   : > { %s3300_s18 = smov %s2555_s19  ;;  %s3302_s21 = smov %s2567_s22 }
 0x49c   : > { %s3301_s19 = smov %s3292_s12  ;;  %s3304_s23 = smov %s2575_s24 }
 0x49d   :  { %38 = sbr.rel (!%p3156_p9) target bundleno = 40 (0x28), region = 160 }
 0x49e   : > { %s3303_s22 = smov %s3294_s26  ;;  %s3305_s24 = smov %s3295_s13 }
 0x49f   : > { %s3306_s26 = smov %s2591_s28 }
 0x4a0   : > { %s3307_s28 = smov %s3298_s9 }
 0x4a4   :  { %1615 = vsyncpa [#allocation8], 1 }
 0x4a5   :  { %1617 = vsyncpa [#allocation8 + $0x1], 1 }
 0x4a6   :  { %1618 = vsyncpa [#allocation11], 1 }
 0x4a7   :  { %1620 = vsyncpa [#allocation11 + $0x1], 1 }
 0x4a8   :  { %1621 = vsyncpa [#allocation14], 1 }
 0x4a9   :  { %1622 = vsyncpa [#allocation9], 1 }
 0x4aa   :  { %1624 = vsyncpa [#allocation9 + $0x1], 1 }

</bundles_post_ra>
